<compile_context>
chip_gen: v7x
topology: tpu7x:2x2x1
jax: 0.10.0
libtpu: 0.0.40
codegen_flags: <defaults>
</compile_context>

<pallas_src>
import functools

import jax
import jax.numpy as jnp
import numpy as np
from jax.experimental import pallas as pl
from jax.experimental.pallas import tpu as pltpu


# ------------------------------ Fused kernel ----------------------------------
def _fused_kernel(x_ref, *refs, num_layers, T, Bp, H):
    """Fused multi-layer LSTM + FC.

    x_ref      : (T*Bp, I)       time-major, batch-padded, flattened input
    per layer  : w_ih (in,4H), w_hh (H,4H), b (1,4H)   [pre-transposed, bias combined,
                                                        g-gate columns pre-scaled by 2]
    then       : w_fc (H,C), b_fc (1,C)
    out_ref    : (Bp, C)
    scratch    : gx (T*Bp,4H), seq (T*Bp,H), h (Bp,H), c (Bp,H)
    """
    layers = []
    idx = 0
    for _ in range(num_layers):
        layers.append((refs[idx], refs[idx + 1], refs[idx + 2]))
        idx += 3
    w_fc_ref, b_fc_ref = refs[idx], refs[idx + 1]
    out_ref = refs[idx + 2]
    gx_ref, seq_ref, h_ref, c_ref = refs[idx + 3:idx + 7]

    # Short static trip count -> fully unroll so the LLO scheduler sees the whole loop.
    unroll = True if T <= 32 else 8

    for l, (w_ih_ref, w_hh_ref, b_ref) in enumerate(layers):
        # Hoisted input projection for the whole sequence: one matmul + bias per layer.
        layer_in = x_ref[...] if l == 0 else seq_ref[...]
        gx_ref[...] = (
            jnp.dot(layer_in, w_ih_ref[...], preferred_element_type=jnp.float32)
            + b_ref[...]
        )

        # Zero initial recurrent state (matches h_0 = c_0 = 0 in the PyTorch module).
        h_ref[...] = jnp.zeros_like(h_ref)
        c_ref[...] = jnp.zeros_like(c_ref)

        w_hh = w_hh_ref[...]                 # hoisted weight load (loop-invariant)
        write_seq = l < num_layers - 1       # last layer: only final h is consumed

        def step(t, carry, w_hh=w_hh, write_seq=write_seq):
            off = pl.multiple_of(t * Bp, Bp)
            gates = gx_ref[pl.ds(off, Bp), :] + jnp.dot(
                h_ref[...], w_hh, preferred_element_type=jnp.float32
            )                                # (Bp, 4H)
            # Single full-width sigmoid (EUP).  Gate order (PyTorch): i, f, g, o.
            # g-gate pre-activations were pre-scaled by 2 -> tanh(x) = 2*sigmoid(2x) - 1.
            s = jax.nn.sigmoid(gates)
            i_g = s[:, 0 * H:1 * H]
            f_g = s[:, 1 * H:2 * H]
            g_g = 2.0 * s[:, 2 * H:3 * H] - 1.0
            o_g = s[:, 3 * H:4 * H]
            c_new = f_g * c_ref[...] + i_g * g_g
            h_new = o_g * jnp.tanh(c_new)
            c_ref[...] = c_new
            h_ref[...] = h_new
            if write_seq:
                seq_ref[pl.ds(off, Bp), :] = h_new
            return carry

        jax.lax.fori_loop(0, T, step, 0, unroll=unroll)

    # Final Linear on h at t = T-1 (== out[:, -1, :] @ W_fc^T + b_fc).
    out_ref[...] = (
        jnp.dot(h_ref[...], w_fc_ref[...], preferred_element_type=jnp.float32)
        + b_fc_ref[...]
    )


def _make_fused_call(T, Bp, I, H, C, num_layers):
    TB = T * Bp
    kernel = functools.partial(
        _fused_kernel, num_layers=num_layers, T=T, Bp=Bp, H=H
    )
    in_specs = [pl.BlockSpec((TB, I), lambda i: (0, 0))]
    for l in range(num_layers):
        in_dim = I if l == 0 else H
        in_specs += [
            pl.BlockSpec((in_dim, 4 * H), lambda i: (0, 0)),
            pl.BlockSpec((H, 4 * H), lambda i: (0, 0)),
            pl.BlockSpec((1, 4 * H), lambda i: (0, 0)),
        ]
    in_specs += [
        pl.BlockSpec((H, C), lambda i: (0, 0)),
        pl.BlockSpec((1, C), lambda i: (0, 0)),
    ]
    return pl.pallas_call(
        kernel,
        out_shape=jax.ShapeDtypeStruct((Bp, C), jnp.float32),
        grid_spec=pltpu.PrefetchScalarGridSpec(
            num_scalar_prefetch=0,
            grid=(1,),
            in_specs=in_specs,
            out_specs=pl.BlockSpec((Bp, C), lambda i: (0, 0)),
            scratch_shapes=[
                pltpu.VMEM((TB, 4 * H), jnp.float32),  # hoisted x-projection gates
                pltpu.VMEM((TB, H), jnp.float32),      # hidden sequence buffer
                pltpu.VMEM((Bp, H), jnp.float32),      # h state
                pltpu.VMEM((Bp, H), jnp.float32),      # c state
            ],
        ),
        compiler_params=pltpu.CompilerParams(
            dimension_semantics=("arbitrary",)  # strictly sequential recurrence
        ),
    )


# ------------------------------ Model wrapper ----------------------------------
def init_params(key, input_size, hidden_size, num_layers, num_classes):
    """PyTorch-equivalent init (+-1/sqrt(H)); weights stored pre-transposed
    (contraction-major, lane-dense) and biases pre-combined (b_ih + b_hh)."""
    params = {"lstm": [], "fc": None}
    bound = 1.0 / np.sqrt(hidden_size)
    for layer in range(num_layers):
        in_dim = input_size if layer == 0 else hidden_size
        key, k1, k2, k3, k4 = jax.random.split(key, 5)
        w_ih = jax.random.uniform(k1, (4 * hidden_size, in_dim),
                                  jnp.float32, -bound, bound)
        w_hh = jax.random.uniform(k2, (4 * hidden_size, hidden_size),
                                  jnp.float32, -bound, bound)
        b_ih = jax.random.uniform(k3, (4 * hidden_size,), jnp.float32, -bound, bound)
        b_hh = jax.random.uniform(k4, (4 * hidden_size,), jnp.float32, -bound, bound)
        params["lstm"].append((w_ih.T, w_hh.T, (b_ih + b_hh)[None, :]))
    key, k1, k2 = jax.random.split(key, 3)
    w_fc = jax.random.uniform(k1, (num_classes, hidden_size), jnp.float32, -bound, bound)
    b_fc = jax.random.uniform(k2, (num_classes,), jnp.float32, -bound, bound)
    params["fc"] = (w_fc.T, b_fc[None, :])
    return params


def _scale_g_gate(w, H):
    """Multiply the g-gate ("cell") columns [2H:3H) by 2 so the kernel can use the
    exact identity tanh(x) = 2*sigmoid(2x) - 1 (single EUP pass per step)."""
    return jnp.concatenate(
        [w[..., :2 * H], 2.0 * w[..., 2 * H:3 * H], w[..., 3 * H:]], axis=-1
    )


@jax.jit
def lstm_parkinsons_forward(x, params):
    """x: (B, T, input_size) batch-first, like the PyTorch module."""
    B, T, I = x.shape
    num_layers = len(params["lstm"])
    H = params["lstm"][0][1].shape[0]
    w_fc_t, b_fc = params["fc"]
    C = w_fc_t.shape[1]

    Bp = ((B + 7) // 8) * 8                               # pad batch to full sublane group
    xt = jnp.transpose(x, (1, 0, 2)).astype(jnp.float32)  # (T, B, I) time-major
    xt = jnp.pad(xt, ((0, 0), (0, Bp - B), (0, 0)))
    x_flat = xt.reshape(T * Bp, I)

    flat_args = [x_flat]
    for (w_ih_t, w_hh_t, b) in params["lstm"]:
        flat_args += [_scale_g_gate(w_ih_t, H),
                      _scale_g_gate(w_hh_t, H),
                      _scale_g_gate(b, H)]
    flat_args += [w_fc_t, b_fc]

    out_p = _make_fused_call(T, Bp, I, H, C, num_layers)(*flat_args)  # (Bp, C)
    return out_p[:B]


# ------------------------------ Pure-JAX reference ------------------------------
def reference_forward(x, params):
    B, T, _ = x.shape
    xt = jnp.transpose(x, (1, 0, 2)).astype(jnp.float32)
    seq = xt
    for (w_ih_t, w_hh_t, b) in params["lstm"]:
        H = w_hh_t.shape[0]
        h = jnp.zeros((B, H), jnp.float32)
        c = jnp.zeros((B, H), jnp.float32)
        outs = []
        for t in range(T):
            gates = seq[t] @ w_ih_t + h @ w_hh_t + b
            i_g = jax.nn.sigmoid(gates[:, 0 * H:1 * H])
            f_g = jax.nn.sigmoid(gates[:, 1 * H:2 * H])
            g_g = jnp.tanh(gates[:, 2 * H:3 * H])
            o_g = jax.nn.sigmoid(gates[:, 3 * H:4 * H])
            c = f_g * c + i_g * g_g
            h = o_g * jnp.tanh(c)
            outs.append(h)
        seq = jnp.stack(outs, axis=0)
    w_fc_t, b_fc = params["fc"]
    return seq[-1] @ w_fc_t + b_fc


# ----------------------------------- Main ---------------------------------------
if __name__ == "__main__":
    INPUT_SIZE = 16
    HIDDEN_SIZE = 32
    NUM_LAYERS = 2
    NUM_CLASSES = 4
    BATCH = 2
    SEQ = 8

    key = jax.random.PRNGKey(0)
    key, pkey, xkey = jax.random.split(key, 3)
    params = init_params(pkey, INPUT_SIZE, HIDDEN_SIZE, NUM_LAYERS, NUM_CLASSES)
    x = jax.random.normal(xkey, (BATCH, SEQ, INPUT_SIZE), jnp.float32)

    out = lstm_parkinsons_forward(x, params)
    out = jax.block_until_ready(out)

    ref = reference_forward(x, params)
    assert out.shape == (BATCH, NUM_CLASSES), out.shape
    np.testing.assert_allclose(np.asarray(out), np.asarray(ref), rtol=3e-5, atol=3e-5)

    print("KERNEL_OK")
</pallas_src>

<mosaic_0001>
module attributes {stable_mosaic.version = 11 : i64} {
  func.func @_fused_kernel(%arg0: i32, %arg1: memref<64x16xf32, #tpu.memory_space<vmem>>, %arg2: memref<16x128xf32, #tpu.memory_space<vmem>>, %arg3: memref<32x128xf32, #tpu.memory_space<vmem>>, %arg4: memref<1x128xf32, #tpu.memory_space<vmem>>, %arg5: memref<32x128xf32, #tpu.memory_space<vmem>>, %arg6: memref<32x128xf32, #tpu.memory_space<vmem>>, %arg7: memref<1x128xf32, #tpu.memory_space<vmem>>, %arg8: memref<32x4xf32, #tpu.memory_space<vmem>>, %arg9: memref<1x4xf32, #tpu.memory_space<vmem>>, %arg10: memref<8x4xf32, #tpu.memory_space<vmem>>, %arg11: memref<64x128xf32, #tpu.memory_space<vmem>>, %arg12: memref<64x32xf32, #tpu.memory_space<vmem>>, %arg13: memref<8x32xf32, #tpu.memory_space<vmem>>, %arg14: memref<8x32xf32, #tpu.memory_space<vmem>>) attributes {dimension_semantics = [#tpu.dimension_semantics<arbitrary>], iteration_bounds = array<i64: 1>, scalar_prefetch = 0 : i64, scratch_operands = 4 : i64, tpu.core_type = #tpu.core_type<tc>, window_params = [{pipeline_mode = #tpu.pipeline_mode<synchronous>, transform_indices = @transform_0, window_bounds = array<i64: 64, 16>}, {pipeline_mode = #tpu.pipeline_mode<synchronous>, transform_indices = @transform_1, window_bounds = array<i64: 16, 128>}, {pipeline_mode = #tpu.pipeline_mode<synchronous>, transform_indices = @transform_2, window_bounds = array<i64: 32, 128>}, {pipeline_mode = #tpu.pipeline_mode<synchronous>, transform_indices = @transform_3, window_bounds = array<i64: 1, 128>}, {pipeline_mode = #tpu.pipeline_mode<synchronous>, transform_indices = @transform_4, window_bounds = array<i64: 32, 128>}, {pipeline_mode = #tpu.pipeline_mode<synchronous>, transform_indices = @transform_5, window_bounds = array<i64: 32, 128>}, {pipeline_mode = #tpu.pipeline_mode<synchronous>, transform_indices = @transform_6, window_bounds = array<i64: 1, 128>}, {pipeline_mode = #tpu.pipeline_mode<synchronous>, transform_indices = @transform_7, window_bounds = array<i64: 32, 4>}, {pipeline_mode = #tpu.pipeline_mode<synchronous>, transform_indices = @transform_8, window_bounds = array<i64: 1, 4>}, {pipeline_mode = #tpu.pipeline_mode<synchronous>, transform_indices = @transform_9, window_bounds = array<i64: 8, 4>}]} {
    %c0 = arith.constant 0 : index
    %c0_0 = arith.constant 0 : index
    %0 = vector.load %arg1[%c0, %c0_0] : memref<64x16xf32, #tpu.memory_space<vmem>>, vector<64x16xf32>
    %c0_1 = arith.constant 0 : index
    %c0_2 = arith.constant 0 : index
    %1 = vector.load %arg2[%c0_1, %c0_2] : memref<16x128xf32, #tpu.memory_space<vmem>>, vector<16x128xf32>
    %cst = arith.constant dense<0.000000e+00> : vector<64x128xf32>
    %2 = tpu.matmul %0, %1, %cst {dimension_numbers = #tpu.dot_dimension_numbers<[1], [0], [0], [1], [0, 0, 1, 1], [], []>} : vector<64x16xf32>, vector<16x128xf32>, vector<64x128xf32> -> vector<64x128xf32>
    %c0_3 = arith.constant 0 : index
    %c0_4 = arith.constant 0 : index
    %3 = vector.load %arg4[%c0_3, %c0_4] : memref<1x128xf32, #tpu.memory_space<vmem>>, vector<1x128xf32>
    %4 = vector.broadcast %3 : vector<1x128xf32> to vector<64x128xf32>
    %5 = arith.addf %2, %4 : vector<64x128xf32>
    %c0_5 = arith.constant 0 : index
    %c0_6 = arith.constant 0 : index
    %6 = vector.load %arg11[%c0_5, %c0_6] : memref<64x128xf32, #tpu.memory_space<vmem>>, vector<64x128xf32>
    tpu.vector_store %arg11[%c0_5, %c0_6], %5 {strides = array<i32>} : memref<64x128xf32, #tpu.memory_space<vmem>>, vector<64x128xf32>,
    %cst_7 = arith.constant 0.000000e+00 : f32
    %7 = vector.broadcast %cst_7 : f32 to vector<8x32xf32>
    %c0_8 = arith.constant 0 : index
    %c0_9 = arith.constant 0 : index
    %8 = vector.load %arg13[%c0_8, %c0_9] : memref<8x32xf32, #tpu.memory_space<vmem>>, vector<8x32xf32>
    tpu.vector_store %arg13[%c0_8, %c0_9], %7 {strides = array<i32>} : memref<8x32xf32, #tpu.memory_space<vmem>>, vector<8x32xf32>,
    %cst_10 = arith.constant 0.000000e+00 : f32
    %9 = vector.broadcast %cst_10 : f32 to vector<8x32xf32>
    %c0_11 = arith.constant 0 : index
    %c0_12 = arith.constant 0 : index
    %10 = vector.load %arg14[%c0_11, %c0_12] : memref<8x32xf32, #tpu.memory_space<vmem>>, vector<8x32xf32>
    tpu.vector_store %arg14[%c0_11, %c0_12], %9 {strides = array<i32>} : memref<8x32xf32, #tpu.memory_space<vmem>>, vector<8x32xf32>,
    %c0_13 = arith.constant 0 : index
    %c0_14 = arith.constant 0 : index
    %11 = vector.load %arg3[%c0_13, %c0_14] : memref<32x128xf32, #tpu.memory_space<vmem>>, vector<32x128xf32>
    %c0_i32 = arith.constant 0 : i32
    %c8_i32 = arith.constant 8 : i32
    %12 = arith.muli %c0_i32, %c8_i32 : i32
    %13 = tpu.assume_multiple %12, 8 : i32
    %14 = arith.index_cast %13 : i32 to index
    %c0_15 = arith.constant 0 : index
    %15 = vector.load %arg11[%14, %c0_15] : memref<64x128xf32, #tpu.memory_space<vmem>>, vector<8x128xf32>
    %c0_16 = arith.constant 0 : index
    %c0_17 = arith.constant 0 : index
    %16 = vector.load %arg13[%c0_16, %c0_17] : memref<8x32xf32, #tpu.memory_space<vmem>>, vector<8x32xf32>
    %cst_18 = arith.constant dense<0.000000e+00> : vector<8x128xf32>
    %17 = tpu.matmul %16, %11, %cst_18 {dimension_numbers = #tpu.dot_dimension_numbers<[1], [0], [0], [1], [0, 0, 1, 1], [], []>} : vector<8x32xf32>, vector<32x128xf32>, vector<8x128xf32> -> vector<8x128xf32>
    %18 = arith.addf %15, %17 : vector<8x128xf32>
    %19 = arith.negf %18 : vector<8x128xf32>
    %20 = math.exp %19 : vector<8x128xf32>
    %cst_19 = arith.constant 1.000000e+00 : f32
    %21 = vector.broadcast %cst_19 : f32 to vector<8x128xf32>
    %22 = arith.addf %21, %20 : vector<8x128xf32>
    %23 = arith.divf %21, %22 : vector<8x128xf32>
    %24 = vector.extract_strided_slice %23 {offsets = [0, 0], sizes = [8, 32], strides = [1, 1]} : vector<8x128xf32> to vector<8x32xf32>
    %25 = vector.extract_strided_slice %23 {offsets = [0, 32], sizes = [8, 32], strides = [1, 1]} : vector<8x128xf32> to vector<8x32xf32>
    %26 = vector.extract_strided_slice %23 {offsets = [0, 64], sizes = [8, 32], strides = [1, 1]} : vector<8x128xf32> to vector<8x32xf32>
    %cst_20 = arith.constant 2.000000e+00 : f32
    %27 = vector.broadcast %cst_20 : f32 to vector<8x32xf32>
    %28 = arith.mulf %27, %26 : vector<8x32xf32>
    %cst_21 = arith.constant 1.000000e+00 : f32
    %29 = vector.broadcast %cst_21 : f32 to vector<8x32xf32>
    %30 = arith.subf %28, %29 : vector<8x32xf32>
    %31 = vector.extract_strided_slice %23 {offsets = [0, 96], sizes = [8, 32], strides = [1, 1]} : vector<8x128xf32> to vector<8x32xf32>
    %c0_22 = arith.constant 0 : index
    %c0_23 = arith.constant 0 : index
    %32 = vector.load %arg14[%c0_22, %c0_23] : memref<8x32xf32, #tpu.memory_space<vmem>>, vector<8x32xf32>
    %33 = arith.mulf %25, %32 : vector<8x32xf32>
    %34 = arith.mulf %24, %30 : vector<8x32xf32>
    %35 = arith.addf %33, %34 : vector<8x32xf32>
    %36 = math.tanh %35 : vector<8x32xf32>
    %37 = arith.mulf %31, %36 : vector<8x32xf32>
    %c0_24 = arith.constant 0 : index
    %c0_25 = arith.constant 0 : index
    %38 = vector.load %arg14[%c0_24, %c0_25] : memref<8x32xf32, #tpu.memory_space<vmem>>, vector<8x32xf32>
    tpu.vector_store %arg14[%c0_24, %c0_25], %35 {strides = array<i32>} : memref<8x32xf32, #tpu.memory_space<vmem>>, vector<8x32xf32>,
    %c0_26 = arith.constant 0 : index
    %c0_27 = arith.constant 0 : index
    %39 = vector.load %arg13[%c0_26, %c0_27] : memref<8x32xf32, #tpu.memory_space<vmem>>, vector<8x32xf32>
    tpu.vector_store %arg13[%c0_26, %c0_27], %37 {strides = array<i32>} : memref<8x32xf32, #tpu.memory_space<vmem>>, vector<8x32xf32>,
    %40 = arith.index_cast %13 : i32 to index
    %c0_28 = arith.constant 0 : index
    %41 = vector.load %arg12[%40, %c0_28] : memref<64x32xf32, #tpu.memory_space<vmem>>, vector<8x32xf32>
    tpu.vector_store %arg12[%40, %c0_28], %37 {strides = array<i32>} : memref<64x32xf32, #tpu.memory_space<vmem>>, vector<8x32xf32>,
    %c1_i32 = arith.constant 1 : i32
    %c8_i32_29 = arith.constant 8 : i32
    %42 = arith.muli %c1_i32, %c8_i32_29 : i32
    %43 = tpu.assume_multiple %42, 8 : i32
    %44 = arith.index_cast %43 : i32 to index
    %c0_30 = arith.constant 0 : index
    %45 = vector.load %arg11[%44, %c0_30] : memref<64x128xf32, #tpu.memory_space<vmem>>, vector<8x128xf32>
    %c0_31 = arith.constant 0 : index
    %c0_32 = arith.constant 0 : index
    %46 = vector.load %arg13[%c0_31, %c0_32] : memref<8x32xf32, #tpu.memory_space<vmem>>, vector<8x32xf32>
    %cst_33 = arith.constant dense<0.000000e+00> : vector<8x128xf32>
    %47 = tpu.matmul %46, %11, %cst_33 {dimension_numbers = #tpu.dot_dimension_numbers<[1], [0], [0], [1], [0, 0, 1, 1], [], []>} : vector<8x32xf32>, vector<32x128xf32>, vector<8x128xf32> -> vector<8x128xf32>
    %48 = arith.addf %45, %47 : vector<8x128xf32>
    %49 = arith.negf %48 : vector<8x128xf32>
    %50 = math.exp %49 : vector<8x128xf32>
    %cst_34 = arith.constant 1.000000e+00 : f32
    %51 = vector.broadcast %cst_34 : f32 to vector<8x128xf32>
    %52 = arith.addf %51, %50 : vector<8x128xf32>
    %53 = arith.divf %51, %52 : vector<8x128xf32>
    %54 = vector.extract_strided_slice %53 {offsets = [0, 0], sizes = [8, 32], strides = [1, 1]} : vector<8x128xf32> to vector<8x32xf32>
    %55 = vector.extract_strided_slice %53 {offsets = [0, 32], sizes = [8, 32], strides = [1, 1]} : vector<8x128xf32> to vector<8x32xf32>
    %56 = vector.extract_strided_slice %53 {offsets = [0, 64], sizes = [8, 32], strides = [1, 1]} : vector<8x128xf32> to vector<8x32xf32>
    %cst_35 = arith.constant 2.000000e+00 : f32
    %57 = vector.broadcast %cst_35 : f32 to vector<8x32xf32>
    %58 = arith.mulf %57, %56 : vector<8x32xf32>
    %cst_36 = arith.constant 1.000000e+00 : f32
    %59 = vector.broadcast %cst_36 : f32 to vector<8x32xf32>
    %60 = arith.subf %58, %59 : vector<8x32xf32>
    %61 = vector.extract_strided_slice %53 {offsets = [0, 96], sizes = [8, 32], strides = [1, 1]} : vector<8x128xf32> to vector<8x32xf32>
    %c0_37 = arith.constant 0 : index
    %c0_38 = arith.constant 0 : index
    %62 = vector.load %arg14[%c0_37, %c0_38] : memref<8x32xf32, #tpu.memory_space<vmem>>, vector<8x32xf32>
    %63 = arith.mulf %55, %62 : vector<8x32xf32>
    %64 = arith.mulf %54, %60 : vector<8x32xf32>
    %65 = arith.addf %63, %64 : vector<8x32xf32>
    %66 = math.tanh %65 : vector<8x32xf32>
    %67 = arith.mulf %61, %66 : vector<8x32xf32>
    %c0_39 = arith.constant 0 : index
    %c0_40 = arith.constant 0 : index
    %68 = vector.load %arg14[%c0_39, %c0_40] : memref<8x32xf32, #tpu.memory_space<vmem>>, vector<8x32xf32>
    tpu.vector_store %arg14[%c0_39, %c0_40], %65 {strides = array<i32>} : memref<8x32xf32, #tpu.memory_space<vmem>>, vector<8x32xf32>,
    %c0_41 = arith.constant 0 : index
    %c0_42 = arith.constant 0 : index
    %69 = vector.load %arg13[%c0_41, %c0_42] : memref<8x32xf32, #tpu.memory_space<vmem>>, vector<8x32xf32>
    tpu.vector_store %arg13[%c0_41, %c0_42], %67 {strides = array<i32>} : memref<8x32xf32, #tpu.memory_space<vmem>>, vector<8x32xf32>,
    %70 = arith.index_cast %43 : i32 to index
    %c0_43 = arith.constant 0 : index
    %71 = vector.load %arg12[%70, %c0_43] : memref<64x32xf32, #tpu.memory_space<vmem>>, vector<8x32xf32>
    tpu.vector_store %arg12[%70, %c0_43], %67 {strides = array<i32>} : memref<64x32xf32, #tpu.memory_space<vmem>>, vector<8x32xf32>,
    %c2_i32 = arith.constant 2 : i32
    %c8_i32_44 = arith.constant 8 : i32
    %72 = arith.muli %c2_i32, %c8_i32_44 : i32
    %73 = tpu.assume_multiple %72, 8 : i32
    %74 = arith.index_cast %73 : i32 to index
    %c0_45 = arith.constant 0 : index
    %75 = vector.load %arg11[%74, %c0_45] : memref<64x128xf32, #tpu.memory_space<vmem>>, vector<8x128xf32>
    %c0_46 = arith.constant 0 : index
    %c0_47 = arith.constant 0 : index
    %76 = vector.load %arg13[%c0_46, %c0_47] : memref<8x32xf32, #tpu.memory_space<vmem>>, vector<8x32xf32>
    %cst_48 = arith.constant dense<0.000000e+00> : vector<8x128xf32>
    %77 = tpu.matmul %76, %11, %cst_48 {dimension_numbers = #tpu.dot_dimension_numbers<[1], [0], [0], [1], [0, 0, 1, 1], [], []>} : vector<8x32xf32>, vector<32x128xf32>, vector<8x128xf32> -> vector<8x128xf32>
    %78 = arith.addf %75, %77 : vector<8x128xf32>
    %79 = arith.negf %78 : vector<8x128xf32>
    %80 = math.exp %79 : vector<8x128xf32>
    %cst_49 = arith.constant 1.000000e+00 : f32
    %81 = vector.broadcast %cst_49 : f32 to vector<8x128xf32>
    %82 = arith.addf %81, %80 : vector<8x128xf32>
    %83 = arith.divf %81, %82 : vector<8x128xf32>
    %84 = vector.extract_strided_slice %83 {offsets = [0, 0], sizes = [8, 32], strides = [1, 1]} : vector<8x128xf32> to vector<8x32xf32>
    %85 = vector.extract_strided_slice %83 {offsets = [0, 32], sizes = [8, 32], strides = [1, 1]} : vector<8x128xf32> to vector<8x32xf32>
    %86 = vector.extract_strided_slice %83 {offsets = [0, 64], sizes = [8, 32], strides = [1, 1]} : vector<8x128xf32> to vector<8x32xf32>
    %cst_50 = arith.constant 2.000000e+00 : f32
    %87 = vector.broadcast %cst_50 : f32 to vector<8x32xf32>
    %88 = arith.mulf %87, %86 : vector<8x32xf32>
    %cst_51 = arith.constant 1.000000e+00 : f32
    %89 = vector.broadcast %cst_51 : f32 to vector<8x32xf32>
    %90 = arith.subf %88, %89 : vector<8x32xf32>
    %91 = vector.extract_strided_slice %83 {offsets = [0, 96], sizes = [8, 32], strides = [1, 1]} : vector<8x128xf32> to vector<8x32xf32>
    %c0_52 = arith.constant 0 : index
    %c0_53 = arith.constant 0 : index
    %92 = vector.load %arg14[%c0_52, %c0_53] : memref<8x32xf32, #tpu.memory_space<vmem>>, vector<8x32xf32>
    %93 = arith.mulf %85, %92 : vector<8x32xf32>
    %94 = arith.mulf %84, %90 : vector<8x32xf32>
    %95 = arith.addf %93, %94 : vector<8x32xf32>
    %96 = math.tanh %95 : vector<8x32xf32>
    %97 = arith.mulf %91, %96 : vector<8x32xf32>
    %c0_54 = arith.constant 0 : index
    %c0_55 = arith.constant 0 : index
    %98 = vector.load %arg14[%c0_54, %c0_55] : memref<8x32xf32, #tpu.memory_space<vmem>>, vector<8x32xf32>
    tpu.vector_store %arg14[%c0_54, %c0_55], %95 {strides = array<i32>} : memref<8x32xf32, #tpu.memory_space<vmem>>, vector<8x32xf32>,
    %c0_56 = arith.constant 0 : index
    %c0_57 = arith.constant 0 : index
    %99 = vector.load %arg13[%c0_56, %c0_57] : memref<8x32xf32, #tpu.memory_space<vmem>>, vector<8x32xf32>
    tpu.vector_store %arg13[%c0_56, %c0_57], %97 {strides = array<i32>} : memref<8x32xf32, #tpu.memory_space<vmem>>, vector<8x32xf32>,
    %100 = arith.index_cast %73 : i32 to index
    %c0_58 = arith.constant 0 : index
    %101 = vector.load %arg12[%100, %c0_58] : memref<64x32xf32, #tpu.memory_space<vmem>>, vector<8x32xf32>
    tpu.vector_store %arg12[%100, %c0_58], %97 {strides = array<i32>} : memref<64x32xf32, #tpu.memory_space<vmem>>, vector<8x32xf32>,
    %c3_i32 = arith.constant 3 : i32
    %c8_i32_59 = arith.constant 8 : i32
    %102 = arith.muli %c3_i32, %c8_i32_59 : i32
    %103 = tpu.assume_multiple %102, 8 : i32
    %104 = arith.index_cast %103 : i32 to index
    %c0_60 = arith.constant 0 : index
    %105 = vector.load %arg11[%104, %c0_60] : memref<64x128xf32, #tpu.memory_space<vmem>>, vector<8x128xf32>
    %c0_61 = arith.constant 0 : index
    %c0_62 = arith.constant 0 : index
    %106 = vector.load %arg13[%c0_61, %c0_62] : memref<8x32xf32, #tpu.memory_space<vmem>>, vector<8x32xf32>
    %cst_63 = arith.constant dense<0.000000e+00> : vector<8x128xf32>
    %107 = tpu.matmul %106, %11, %cst_63 {dimension_numbers = #tpu.dot_dimension_numbers<[1], [0], [0], [1], [0, 0, 1, 1], [], []>} : vector<8x32xf32>, vector<32x128xf32>, vector<8x128xf32> -> vector<8x128xf32>
    %108 = arith.addf %105, %107 : vector<8x128xf32>
    %109 = arith.negf %108 : vector<8x128xf32>
    %110 = math.exp %109 : vector<8x128xf32>
    %cst_64 = arith.constant 1.000000e+00 : f32
    %111 = vector.broadcast %cst_64 : f32 to vector<8x128xf32>
    %112 = arith.addf %111, %110 : vector<8x128xf32>
    %113 = arith.divf %111, %112 : vector<8x128xf32>
    %114 = vector.extract_strided_slice %113 {offsets = [0, 0], sizes = [8, 32], strides = [1, 1]} : vector<8x128xf32> to vector<8x32xf32>
    %115 = vector.extract_strided_slice %113 {offsets = [0, 32], sizes = [8, 32], strides = [1, 1]} : vector<8x128xf32> to vector<8x32xf32>
    %116 = vector.extract_strided_slice %113 {offsets = [0, 64], sizes = [8, 32], strides = [1, 1]} : vector<8x128xf32> to vector<8x32xf32>
    %cst_65 = arith.constant 2.000000e+00 : f32
    %117 = vector.broadcast %cst_65 : f32 to vector<8x32xf32>
    %118 = arith.mulf %117, %116 : vector<8x32xf32>
    %cst_66 = arith.constant 1.000000e+00 : f32
    %119 = vector.broadcast %cst_66 : f32 to vector<8x32xf32>
    %120 = arith.subf %118, %119 : vector<8x32xf32>
    %121 = vector.extract_strided_slice %113 {offsets = [0, 96], sizes = [8, 32], strides = [1, 1]} : vector<8x128xf32> to vector<8x32xf32>
    %c0_67 = arith.constant 0 : index
    %c0_68 = arith.constant 0 : index
    %122 = vector.load %arg14[%c0_67, %c0_68] : memref<8x32xf32, #tpu.memory_space<vmem>>, vector<8x32xf32>
    %123 = arith.mulf %115, %122 : vector<8x32xf32>
    %124 = arith.mulf %114, %120 : vector<8x32xf32>
    %125 = arith.addf %123, %124 : vector<8x32xf32>
    %126 = math.tanh %125 : vector<8x32xf32>
    %127 = arith.mulf %121, %126 : vector<8x32xf32>
    %c0_69 = arith.constant 0 : index
    %c0_70 = arith.constant 0 : index
    %128 = vector.load %arg14[%c0_69, %c0_70] : memref<8x32xf32, #tpu.memory_space<vmem>>, vector<8x32xf32>
    tpu.vector_store %arg14[%c0_69, %c0_70], %125 {strides = array<i32>} : memref<8x32xf32, #tpu.memory_space<vmem>>, vector<8x32xf32>,
    %c0_71 = arith.constant 0 : index
    %c0_72 = arith.constant 0 : index
    %129 = vector.load %arg13[%c0_71, %c0_72] : memref<8x32xf32, #tpu.memory_space<vmem>>, vector<8x32xf32>
    tpu.vector_store %arg13[%c0_71, %c0_72], %127 {strides = array<i32>} : memref<8x32xf32, #tpu.memory_space<vmem>>, vector<8x32xf32>,
    %130 = arith.index_cast %103 : i32 to index
    %c0_73 = arith.constant 0 : index
    %131 = vector.load %arg12[%130, %c0_73] : memref<64x32xf32, #tpu.memory_space<vmem>>, vector<8x32xf32>
    tpu.vector_store %arg12[%130, %c0_73], %127 {strides = array<i32>} : memref<64x32xf32, #tpu.memory_space<vmem>>, vector<8x32xf32>,
    %c4_i32 = arith.constant 4 : i32
    %c8_i32_74 = arith.constant 8 : i32
    %132 = arith.muli %c4_i32, %c8_i32_74 : i32
    %133 = tpu.assume_multiple %132, 8 : i32
    %134 = arith.index_cast %133 : i32 to index
    %c0_75 = arith.constant 0 : index
    %135 = vector.load %arg11[%134, %c0_75] : memref<64x128xf32, #tpu.memory_space<vmem>>, vector<8x128xf32>
    %c0_76 = arith.constant 0 : index
    %c0_77 = arith.constant 0 : index
    %136 = vector.load %arg13[%c0_76, %c0_77] : memref<8x32xf32, #tpu.memory_space<vmem>>, vector<8x32xf32>
    %cst_78 = arith.constant dense<0.000000e+00> : vector<8x128xf32>
    %137 = tpu.matmul %136, %11, %cst_78 {dimension_numbers = #tpu.dot_dimension_numbers<[1], [0], [0], [1], [0, 0, 1, 1], [], []>} : vector<8x32xf32>, vector<32x128xf32>, vector<8x128xf32> -> vector<8x128xf32>
    %138 = arith.addf %135, %137 : vector<8x128xf32>
    %139 = arith.negf %138 : vector<8x128xf32>
    %140 = math.exp %139 : vector<8x128xf32>
    %cst_79 = arith.constant 1.000000e+00 : f32
    %141 = vector.broadcast %cst_79 : f32 to vector<8x128xf32>
    %142 = arith.addf %141, %140 : vector<8x128xf32>
    %143 = arith.divf %141, %142 : vector<8x128xf32>
    %144 = vector.extract_strided_slice %143 {offsets = [0, 0], sizes = [8, 32], strides = [1, 1]} : vector<8x128xf32> to vector<8x32xf32>
    %145 = vector.extract_strided_slice %143 {offsets = [0, 32], sizes = [8, 32], strides = [1, 1]} : vector<8x128xf32> to vector<8x32xf32>
    %146 = vector.extract_strided_slice %143 {offsets = [0, 64], sizes = [8, 32], strides = [1, 1]} : vector<8x128xf32> to vector<8x32xf32>
    %cst_80 = arith.constant 2.000000e+00 : f32
    %147 = vector.broadcast %cst_80 : f32 to vector<8x32xf32>
    %148 = arith.mulf %147, %146 : vector<8x32xf32>
    %cst_81 = arith.constant 1.000000e+00 : f32
    %149 = vector.broadcast %cst_81 : f32 to vector<8x32xf32>
    %150 = arith.subf %148, %149 : vector<8x32xf32>
    %151 = vector.extract_strided_slice %143 {offsets = [0, 96], sizes = [8, 32], strides = [1, 1]} : vector<8x128xf32> to vector<8x32xf32>
    %c0_82 = arith.constant 0 : index
    %c0_83 = arith.constant 0 : index
    %152 = vector.load %arg14[%c0_82, %c0_83] : memref<8x32xf32, #tpu.memory_space<vmem>>, vector<8x32xf32>
    %153 = arith.mulf %145, %152 : vector<8x32xf32>
    %154 = arith.mulf %144, %150 : vector<8x32xf32>
    %155 = arith.addf %153, %154 : vector<8x32xf32>
    %156 = math.tanh %155 : vector<8x32xf32>
    %157 = arith.mulf %151, %156 : vector<8x32xf32>
    %c0_84 = arith.constant 0 : index
    %c0_85 = arith.constant 0 : index
    %158 = vector.load %arg14[%c0_84, %c0_85] : memref<8x32xf32, #tpu.memory_space<vmem>>, vector<8x32xf32>
    tpu.vector_store %arg14[%c0_84, %c0_85], %155 {strides = array<i32>} : memref<8x32xf32, #tpu.memory_space<vmem>>, vector<8x32xf32>,
    %c0_86 = arith.constant 0 : index
    %c0_87 = arith.constant 0 : index
    %159 = vector.load %arg13[%c0_86, %c0_87] : memref<8x32xf32, #tpu.memory_space<vmem>>, vector<8x32xf32>
    tpu.vector_store %arg13[%c0_86, %c0_87], %157 {strides = array<i32>} : memref<8x32xf32, #tpu.memory_space<vmem>>, vector<8x32xf32>,
    %160 = arith.index_cast %133 : i32 to index
    %c0_88 = arith.constant 0 : index
    %161 = vector.load %arg12[%160, %c0_88] : memref<64x32xf32, #tpu.memory_space<vmem>>, vector<8x32xf32>
    tpu.vector_store %arg12[%160, %c0_88], %157 {strides = array<i32>} : memref<64x32xf32, #tpu.memory_space<vmem>>, vector<8x32xf32>,
    %c5_i32 = arith.constant 5 : i32
    %c8_i32_89 = arith.constant 8 : i32
    %162 = arith.muli %c5_i32, %c8_i32_89 : i32
    %163 = tpu.assume_multiple %162, 8 : i32
    %164 = arith.index_cast %163 : i32 to index
    %c0_90 = arith.constant 0 : index
    %165 = vector.load %arg11[%164, %c0_90] : memref<64x128xf32, #tpu.memory_space<vmem>>, vector<8x128xf32>
    %c0_91 = arith.constant 0 : index
    %c0_92 = arith.constant 0 : index
    %166 = vector.load %arg13[%c0_91, %c0_92] : memref<8x32xf32, #tpu.memory_space<vmem>>, vector<8x32xf32>
    %cst_93 = arith.constant dense<0.000000e+00> : vector<8x128xf32>
    %167 = tpu.matmul %166, %11, %cst_93 {dimension_numbers = #tpu.dot_dimension_numbers<[1], [0], [0], [1], [0, 0, 1, 1], [], []>} : vector<8x32xf32>, vector<32x128xf32>, vector<8x128xf32> -> vector<8x128xf32>
    %168 = arith.addf %165, %167 : vector<8x128xf32>
    %169 = arith.negf %168 : vector<8x128xf32>
    %170 = math.exp %169 : vector<8x128xf32>
    %cst_94 = arith.constant 1.000000e+00 : f32
    %171 = vector.broadcast %cst_94 : f32 to vector<8x128xf32>
    %172 = arith.addf %171, %170 : vector<8x128xf32>
    %173 = arith.divf %171, %172 : vector<8x128xf32>
    %174 = vector.extract_strided_slice %173 {offsets = [0, 0], sizes = [8, 32], strides = [1, 1]} : vector<8x128xf32> to vector<8x32xf32>
    %175 = vector.extract_strided_slice %173 {offsets = [0, 32], sizes = [8, 32], strides = [1, 1]} : vector<8x128xf32> to vector<8x32xf32>
    %176 = vector.extract_strided_slice %173 {offsets = [0, 64], sizes = [8, 32], strides = [1, 1]} : vector<8x128xf32> to vector<8x32xf32>
    %cst_95 = arith.constant 2.000000e+00 : f32
    %177 = vector.broadcast %cst_95 : f32 to vector<8x32xf32>
    %178 = arith.mulf %177, %176 : vector<8x32xf32>
    %cst_96 = arith.constant 1.000000e+00 : f32
    %179 = vector.broadcast %cst_96 : f32 to vector<8x32xf32>
    %180 = arith.subf %178, %179 : vector<8x32xf32>
    %181 = vector.extract_strided_slice %173 {offsets = [0, 96], sizes = [8, 32], strides = [1, 1]} : vector<8x128xf32> to vector<8x32xf32>
    %c0_97 = arith.constant 0 : index
    %c0_98 = arith.constant 0 : index
    %182 = vector.load %arg14[%c0_97, %c0_98] : memref<8x32xf32, #tpu.memory_space<vmem>>, vector<8x32xf32>
    %183 = arith.mulf %175, %182 : vector<8x32xf32>
    %184 = arith.mulf %174, %180 : vector<8x32xf32>
    %185 = arith.addf %183, %184 : vector<8x32xf32>
    %186 = math.tanh %185 : vector<8x32xf32>
    %187 = arith.mulf %181, %186 : vector<8x32xf32>
    %c0_99 = arith.constant 0 : index
    %c0_100 = arith.constant 0 : index
    %188 = vector.load %arg14[%c0_99, %c0_100] : memref<8x32xf32, #tpu.memory_space<vmem>>, vector<8x32xf32>
    tpu.vector_store %arg14[%c0_99, %c0_100], %185 {strides = array<i32>} : memref<8x32xf32, #tpu.memory_space<vmem>>, vector<8x32xf32>,
    %c0_101 = arith.constant 0 : index
    %c0_102 = arith.constant 0 : index
    %189 = vector.load %arg13[%c0_101, %c0_102] : memref<8x32xf32, #tpu.memory_space<vmem>>, vector<8x32xf32>
    tpu.vector_store %arg13[%c0_101, %c0_102], %187 {strides = array<i32>} : memref<8x32xf32, #tpu.memory_space<vmem>>, vector<8x32xf32>,
    %190 = arith.index_cast %163 : i32 to index
    %c0_103 = arith.constant 0 : index
    %191 = vector.load %arg12[%190, %c0_103] : memref<64x32xf32, #tpu.memory_space<vmem>>, vector<8x32xf32>
    tpu.vector_store %arg12[%190, %c0_103], %187 {strides = array<i32>} : memref<64x32xf32, #tpu.memory_space<vmem>>, vector<8x32xf32>,
    %c6_i32 = arith.constant 6 : i32
    %c8_i32_104 = arith.constant 8 : i32
    %192 = arith.muli %c6_i32, %c8_i32_104 : i32
    %193 = tpu.assume_multiple %192, 8 : i32
    %194 = arith.index_cast %193 : i32 to index
    %c0_105 = arith.constant 0 : index
    %195 = vector.load %arg11[%194, %c0_105] : memref<64x128xf32, #tpu.memory_space<vmem>>, vector<8x128xf32>
    %c0_106 = arith.constant 0 : index
    %c0_107 = arith.constant 0 : index
    %196 = vector.load %arg13[%c0_106, %c0_107] : memref<8x32xf32, #tpu.memory_space<vmem>>, vector<8x32xf32>
    %cst_108 = arith.constant dense<0.000000e+00> : vector<8x128xf32>
    %197 = tpu.matmul %196, %11, %cst_108 {dimension_numbers = #tpu.dot_dimension_numbers<[1], [0], [0], [1], [0, 0, 1, 1], [], []>} : vector<8x32xf32>, vector<32x128xf32>, vector<8x128xf32> -> vector<8x128xf32>
    %198 = arith.addf %195, %197 : vector<8x128xf32>
    %199 = arith.negf %198 : vector<8x128xf32>
    %200 = math.exp %199 : vector<8x128xf32>
    %cst_109 = arith.constant 1.000000e+00 : f32
    %201 = vector.broadcast %cst_109 : f32 to vector<8x128xf32>
    %202 = arith.addf %201, %200 : vector<8x128xf32>
    %203 = arith.divf %201, %202 : vector<8x128xf32>
    %204 = vector.extract_strided_slice %203 {offsets = [0, 0], sizes = [8, 32], strides = [1, 1]} : vector<8x128xf32> to vector<8x32xf32>
    %205 = vector.extract_strided_slice %203 {offsets = [0, 32], sizes = [8, 32], strides = [1, 1]} : vector<8x128xf32> to vector<8x32xf32>
    %206 = vector.extract_strided_slice %203 {offsets = [0, 64], sizes = [8, 32], strides = [1, 1]} : vector<8x128xf32> to vector<8x32xf32>
    %cst_110 = arith.constant 2.000000e+00 : f32
    %207 = vector.broadcast %cst_110 : f32 to vector<8x32xf32>
    %208 = arith.mulf %207, %206 : vector<8x32xf32>
    %cst_111 = arith.constant 1.000000e+00 : f32
    %209 = vector.broadcast %cst_111 : f32 to vector<8x32xf32>
    %210 = arith.subf %208, %209 : vector<8x32xf32>
    %211 = vector.extract_strided_slice %203 {offsets = [0, 96], sizes = [8, 32], strides = [1, 1]} : vector<8x128xf32> to vector<8x32xf32>
    %c0_112 = arith.constant 0 : index
    %c0_113 = arith.constant 0 : index
    %212 = vector.load %arg14[%c0_112, %c0_113] : memref<8x32xf32, #tpu.memory_space<vmem>>, vector<8x32xf32>
    %213 = arith.mulf %205, %212 : vector<8x32xf32>
    %214 = arith.mulf %204, %210 : vector<8x32xf32>
    %215 = arith.addf %213, %214 : vector<8x32xf32>
    %216 = math.tanh %215 : vector<8x32xf32>
    %217 = arith.mulf %211, %216 : vector<8x32xf32>
    %c0_114 = arith.constant 0 : index
    %c0_115 = arith.constant 0 : index
    %218 = vector.load %arg14[%c0_114, %c0_115] : memref<8x32xf32, #tpu.memory_space<vmem>>, vector<8x32xf32>
    tpu.vector_store %arg14[%c0_114, %c0_115], %215 {strides = array<i32>} : memref<8x32xf32, #tpu.memory_space<vmem>>, vector<8x32xf32>,
    %c0_116 = arith.constant 0 : index
    %c0_117 = arith.constant 0 : index
    %219 = vector.load %arg13[%c0_116, %c0_117] : memref<8x32xf32, #tpu.memory_space<vmem>>, vector<8x32xf32>
    tpu.vector_store %arg13[%c0_116, %c0_117], %217 {strides = array<i32>} : memref<8x32xf32, #tpu.memory_space<vmem>>, vector<8x32xf32>,
    %220 = arith.index_cast %193 : i32 to index
    %c0_118 = arith.constant 0 : index
    %221 = vector.load %arg12[%220, %c0_118] : memref<64x32xf32, #tpu.memory_space<vmem>>, vector<8x32xf32>
    tpu.vector_store %arg12[%220, %c0_118], %217 {strides = array<i32>} : memref<64x32xf32, #tpu.memory_space<vmem>>, vector<8x32xf32>,
    %c7_i32 = arith.constant 7 : i32
    %c8_i32_119 = arith.constant 8 : i32
    %222 = arith.muli %c7_i32, %c8_i32_119 : i32
    %223 = tpu.assume_multiple %222, 8 : i32
    %224 = arith.index_cast %223 : i32 to index
    %c0_120 = arith.constant 0 : index
    %225 = vector.load %arg11[%224, %c0_120] : memref<64x128xf32, #tpu.memory_space<vmem>>, vector<8x128xf32>
    %c0_121 = arith.constant 0 : index
    %c0_122 = arith.constant 0 : index
    %226 = vector.load %arg13[%c0_121, %c0_122] : memref<8x32xf32, #tpu.memory_space<vmem>>, vector<8x32xf32>
    %cst_123 = arith.constant dense<0.000000e+00> : vector<8x128xf32>
    %227 = tpu.matmul %226, %11, %cst_123 {dimension_numbers = #tpu.dot_dimension_numbers<[1], [0], [0], [1], [0, 0, 1, 1], [], []>} : vector<8x32xf32>, vector<32x128xf32>, vector<8x128xf32> -> vector<8x128xf32>
    %228 = arith.addf %225, %227 : vector<8x128xf32>
    %229 = arith.negf %228 : vector<8x128xf32>
    %230 = math.exp %229 : vector<8x128xf32>
    %cst_124 = arith.constant 1.000000e+00 : f32
    %231 = vector.broadcast %cst_124 : f32 to vector<8x128xf32>
    %232 = arith.addf %231, %230 : vector<8x128xf32>
    %233 = arith.divf %231, %232 : vector<8x128xf32>
    %234 = vector.extract_strided_slice %233 {offsets = [0, 0], sizes = [8, 32], strides = [1, 1]} : vector<8x128xf32> to vector<8x32xf32>
    %235 = vector.extract_strided_slice %233 {offsets = [0, 32], sizes = [8, 32], strides = [1, 1]} : vector<8x128xf32> to vector<8x32xf32>
    %236 = vector.extract_strided_slice %233 {offsets = [0, 64], sizes = [8, 32], strides = [1, 1]} : vector<8x128xf32> to vector<8x32xf32>
    %cst_125 = arith.constant 2.000000e+00 : f32
    %237 = vector.broadcast %cst_125 : f32 to vector<8x32xf32>
    %238 = arith.mulf %237, %236 : vector<8x32xf32>
    %cst_126 = arith.constant 1.000000e+00 : f32
    %239 = vector.broadcast %cst_126 : f32 to vector<8x32xf32>
    %240 = arith.subf %238, %239 : vector<8x32xf32>
    %241 = vector.extract_strided_slice %233 {offsets = [0, 96], sizes = [8, 32], strides = [1, 1]} : vector<8x128xf32> to vector<8x32xf32>
    %c0_127 = arith.constant 0 : index
    %c0_128 = arith.constant 0 : index
    %242 = vector.load %arg14[%c0_127, %c0_128] : memref<8x32xf32, #tpu.memory_space<vmem>>, vector<8x32xf32>
    %243 = arith.mulf %235, %242 : vector<8x32xf32>
    %244 = arith.mulf %234, %240 : vector<8x32xf32>
    %245 = arith.addf %243, %244 : vector<8x32xf32>
    %246 = math.tanh %245 : vector<8x32xf32>
    %247 = arith.mulf %241, %246 : vector<8x32xf32>
    %c0_129 = arith.constant 0 : index
    %c0_130 = arith.constant 0 : index
    %248 = vector.load %arg14[%c0_129, %c0_130] : memref<8x32xf32, #tpu.memory_space<vmem>>, vector<8x32xf32>
    tpu.vector_store %arg14[%c0_129, %c0_130], %245 {strides = array<i32>} : memref<8x32xf32, #tpu.memory_space<vmem>>, vector<8x32xf32>,
    %c0_131 = arith.constant 0 : index
    %c0_132 = arith.constant 0 : index
    %249 = vector.load %arg13[%c0_131, %c0_132] : memref<8x32xf32, #tpu.memory_space<vmem>>, vector<8x32xf32>
    tpu.vector_store %arg13[%c0_131, %c0_132], %247 {strides = array<i32>} : memref<8x32xf32, #tpu.memory_space<vmem>>, vector<8x32xf32>,
    %250 = arith.index_cast %223 : i32 to index
    %c0_133 = arith.constant 0 : index
    %251 = vector.load %arg12[%250, %c0_133] : memref<64x32xf32, #tpu.memory_space<vmem>>, vector<8x32xf32>
    tpu.vector_store %arg12[%250, %c0_133], %247 {strides = array<i32>} : memref<64x32xf32, #tpu.memory_space<vmem>>, vector<8x32xf32>,
    %c8_i32_134 = arith.constant 8 : i32
    %c0_135 = arith.constant 0 : index
    %c0_136 = arith.constant 0 : index
    %252 = vector.load %arg12[%c0_135, %c0_136] : memref<64x32xf32, #tpu.memory_space<vmem>>, vector<64x32xf32>
    %c0_137 = arith.constant 0 : index
    %c0_138 = arith.constant 0 : index
    %253 = vector.load %arg5[%c0_137, %c0_138] : memref<32x128xf32, #tpu.memory_space<vmem>>, vector<32x128xf32>
    %cst_139 = arith.constant dense<0.000000e+00> : vector<64x128xf32>
    %254 = tpu.matmul %252, %253, %cst_139 {dimension_numbers = #tpu.dot_dimension_numbers<[1], [0], [0], [1], [0, 0, 1, 1], [], []>} : vector<64x32xf32>, vector<32x128xf32>, vector<64x128xf32> -> vector<64x128xf32>
    %c0_140 = arith.constant 0 : index
    %c0_141 = arith.constant 0 : index
    %255 = vector.load %arg7[%c0_140, %c0_141] : memref<1x128xf32, #tpu.memory_space<vmem>>, vector<1x128xf32>
    %256 = vector.broadcast %255 : vector<1x128xf32> to vector<64x128xf32>
    %257 = arith.addf %254, %256 : vector<64x128xf32>
    %c0_142 = arith.constant 0 : index
    %c0_143 = arith.constant 0 : index
    %258 = vector.load %arg11[%c0_142, %c0_143] : memref<64x128xf32, #tpu.memory_space<vmem>>, vector<64x128xf32>
    tpu.vector_store %arg11[%c0_142, %c0_143], %257 {strides = array<i32>} : memref<64x128xf32, #tpu.memory_space<vmem>>, vector<64x128xf32>,
    %cst_144 = arith.constant 0.000000e+00 : f32
    %259 = vector.broadcast %cst_144 : f32 to vector<8x32xf32>
    %c0_145 = arith.constant 0 : index
    %c0_146 = arith.constant 0 : index
    %260 = vector.load %arg13[%c0_145, %c0_146] : memref<8x32xf32, #tpu.memory_space<vmem>>, vector<8x32xf32>
    tpu.vector_store %arg13[%c0_145, %c0_146], %259 {strides = array<i32>} : memref<8x32xf32, #tpu.memory_space<vmem>>, vector<8x32xf32>,
    %cst_147 = arith.constant 0.000000e+00 : f32
    %261 = vector.broadcast %cst_147 : f32 to vector<8x32xf32>
    %c0_148 = arith.constant 0 : index
    %c0_149 = arith.constant 0 : index
    %262 = vector.load %arg14[%c0_148, %c0_149] : memref<8x32xf32, #tpu.memory_space<vmem>>, vector<8x32xf32>
    tpu.vector_store %arg14[%c0_148, %c0_149], %261 {strides = array<i32>} : memref<8x32xf32, #tpu.memory_space<vmem>>, vector<8x32xf32>,
    %c0_150 = arith.constant 0 : index
    %c0_151 = arith.constant 0 : index
    %263 = vector.load %arg6[%c0_150, %c0_151] : memref<32x128xf32, #tpu.memory_space<vmem>>, vector<32x128xf32>
    %c0_i32_152 = arith.constant 0 : i32
    %c8_i32_153 = arith.constant 8 : i32
    %264 = arith.muli %c0_i32_152, %c8_i32_153 : i32
    %265 = tpu.assume_multiple %264, 8 : i32
    %266 = arith.index_cast %265 : i32 to index
    %c0_154 = arith.constant 0 : index
    %267 = vector.load %arg11[%266, %c0_154] : memref<64x128xf32, #tpu.memory_space<vmem>>, vector<8x128xf32>
    %c0_155 = arith.constant 0 : index
    %c0_156 = arith.constant 0 : index
    %268 = vector.load %arg13[%c0_155, %c0_156] : memref<8x32xf32, #tpu.memory_space<vmem>>, vector<8x32xf32>
    %cst_157 = arith.constant dense<0.000000e+00> : vector<8x128xf32>
    %269 = tpu.matmul %268, %263, %cst_157 {dimension_numbers = #tpu.dot_dimension_numbers<[1], [0], [0], [1], [0, 0, 1, 1], [], []>} : vector<8x32xf32>, vector<32x128xf32>, vector<8x128xf32> -> vector<8x128xf32>
    %270 = arith.addf %267, %269 : vector<8x128xf32>
    %271 = arith.negf %270 : vector<8x128xf32>
    %272 = math.exp %271 : vector<8x128xf32>
    %cst_158 = arith.constant 1.000000e+00 : f32
    %273 = vector.broadcast %cst_158 : f32 to vector<8x128xf32>
    %274 = arith.addf %273, %272 : vector<8x128xf32>
    %275 = arith.divf %273, %274 : vector<8x128xf32>
    %276 = vector.extract_strided_slice %275 {offsets = [0, 0], sizes = [8, 32], strides = [1, 1]} : vector<8x128xf32> to vector<8x32xf32>
    %277 = vector.extract_strided_slice %275 {offsets = [0, 32], sizes = [8, 32], strides = [1, 1]} : vector<8x128xf32> to vector<8x32xf32>
    %278 = vector.extract_strided_slice %275 {offsets = [0, 64], sizes = [8, 32], strides = [1, 1]} : vector<8x128xf32> to vector<8x32xf32>
    %cst_159 = arith.constant 2.000000e+00 : f32
    %279 = vector.broadcast %cst_159 : f32 to vector<8x32xf32>
    %280 = arith.mulf %279, %278 : vector<8x32xf32>
    %cst_160 = arith.constant 1.000000e+00 : f32
    %281 = vector.broadcast %cst_160 : f32 to vector<8x32xf32>
    %282 = arith.subf %280, %281 : vector<8x32xf32>
    %283 = vector.extract_strided_slice %275 {offsets = [0, 96], sizes = [8, 32], strides = [1, 1]} : vector<8x128xf32> to vector<8x32xf32>
    %c0_161 = arith.constant 0 : index
    %c0_162 = arith.constant 0 : index
    %284 = vector.load %arg14[%c0_161, %c0_162] : memref<8x32xf32, #tpu.memory_space<vmem>>, vector<8x32xf32>
    %285 = arith.mulf %277, %284 : vector<8x32xf32>
    %286 = arith.mulf %276, %282 : vector<8x32xf32>
    %287 = arith.addf %285, %286 : vector<8x32xf32>
    %288 = math.tanh %287 : vector<8x32xf32>
    %289 = arith.mulf %283, %288 : vector<8x32xf32>
    %c0_163 = arith.constant 0 : index
    %c0_164 = arith.constant 0 : index
    %290 = vector.load %arg14[%c0_163, %c0_164] : memref<8x32xf32, #tpu.memory_space<vmem>>, vector<8x32xf32>
    tpu.vector_store %arg14[%c0_163, %c0_164], %287 {strides = array<i32>} : memref<8x32xf32, #tpu.memory_space<vmem>>, vector<8x32xf32>,
    %c0_165 = arith.constant 0 : index
    %c0_166 = arith.constant 0 : index
    %291 = vector.load %arg13[%c0_165, %c0_166] : memref<8x32xf32, #tpu.memory_space<vmem>>, vector<8x32xf32>
    tpu.vector_store %arg13[%c0_165, %c0_166], %289 {strides = array<i32>} : memref<8x32xf32, #tpu.memory_space<vmem>>, vector<8x32xf32>,
    %c1_i32_167 = arith.constant 1 : i32
    %c8_i32_168 = arith.constant 8 : i32
    %292 = arith.muli %c1_i32_167, %c8_i32_168 : i32
    %293 = tpu.assume_multiple %292, 8 : i32
    %294 = arith.index_cast %293 : i32 to index
    %c0_169 = arith.constant 0 : index
    %295 = vector.load %arg11[%294, %c0_169] : memref<64x128xf32, #tpu.memory_space<vmem>>, vector<8x128xf32>
    %c0_170 = arith.constant 0 : index
    %c0_171 = arith.constant 0 : index
    %296 = vector.load %arg13[%c0_170, %c0_171] : memref<8x32xf32, #tpu.memory_space<vmem>>, vector<8x32xf32>
    %cst_172 = arith.constant dense<0.000000e+00> : vector<8x128xf32>
    %297 = tpu.matmul %296, %263, %cst_172 {dimension_numbers = #tpu.dot_dimension_numbers<[1], [0], [0], [1], [0, 0, 1, 1], [], []>} : vector<8x32xf32>, vector<32x128xf32>, vector<8x128xf32> -> vector<8x128xf32>
    %298 = arith.addf %295, %297 : vector<8x128xf32>
    %299 = arith.negf %298 : vector<8x128xf32>
    %300 = math.exp %299 : vector<8x128xf32>
    %cst_173 = arith.constant 1.000000e+00 : f32
    %301 = vector.broadcast %cst_173 : f32 to vector<8x128xf32>
    %302 = arith.addf %301, %300 : vector<8x128xf32>
    %303 = arith.divf %301, %302 : vector<8x128xf32>
    %304 = vector.extract_strided_slice %303 {offsets = [0, 0], sizes = [8, 32], strides = [1, 1]} : vector<8x128xf32> to vector<8x32xf32>
    %305 = vector.extract_strided_slice %303 {offsets = [0, 32], sizes = [8, 32], strides = [1, 1]} : vector<8x128xf32> to vector<8x32xf32>
    %306 = vector.extract_strided_slice %303 {offsets = [0, 64], sizes = [8, 32], strides = [1, 1]} : vector<8x128xf32> to vector<8x32xf32>
    %cst_174 = arith.constant 2.000000e+00 : f32
    %307 = vector.broadcast %cst_174 : f32 to vector<8x32xf32>
    %308 = arith.mulf %307, %306 : vector<8x32xf32>
    %cst_175 = arith.constant 1.000000e+00 : f32
    %309 = vector.broadcast %cst_175 : f32 to vector<8x32xf32>
    %310 = arith.subf %308, %309 : vector<8x32xf32>
    %311 = vector.extract_strided_slice %303 {offsets = [0, 96], sizes = [8, 32], strides = [1, 1]} : vector<8x128xf32> to vector<8x32xf32>
    %c0_176 = arith.constant 0 : index
    %c0_177 = arith.constant 0 : index
    %312 = vector.load %arg14[%c0_176, %c0_177] : memref<8x32xf32, #tpu.memory_space<vmem>>, vector<8x32xf32>
    %313 = arith.mulf %305, %312 : vector<8x32xf32>
    %314 = arith.mulf %304, %310 : vector<8x32xf32>
    %315 = arith.addf %313, %314 : vector<8x32xf32>
    %316 = math.tanh %315 : vector<8x32xf32>
    %317 = arith.mulf %311, %316 : vector<8x32xf32>
    %c0_178 = arith.constant 0 : index
    %c0_179 = arith.constant 0 : index
    %318 = vector.load %arg14[%c0_178, %c0_179] : memref<8x32xf32, #tpu.memory_space<vmem>>, vector<8x32xf32>
    tpu.vector_store %arg14[%c0_178, %c0_179], %315 {strides = array<i32>} : memref<8x32xf32, #tpu.memory_space<vmem>>, vector<8x32xf32>,
    %c0_180 = arith.constant 0 : index
    %c0_181 = arith.constant 0 : index
    %319 = vector.load %arg13[%c0_180, %c0_181] : memref<8x32xf32, #tpu.memory_space<vmem>>, vector<8x32xf32>
    tpu.vector_store %arg13[%c0_180, %c0_181], %317 {strides = array<i32>} : memref<8x32xf32, #tpu.memory_space<vmem>>, vector<8x32xf32>,
    %c2_i32_182 = arith.constant 2 : i32
    %c8_i32_183 = arith.constant 8 : i32
    %320 = arith.muli %c2_i32_182, %c8_i32_183 : i32
    %321 = tpu.assume_multiple %320, 8 : i32
    %322 = arith.index_cast %321 : i32 to index
    %c0_184 = arith.constant 0 : index
    %323 = vector.load %arg11[%322, %c0_184] : memref<64x128xf32, #tpu.memory_space<vmem>>, vector<8x128xf32>
    %c0_185 = arith.constant 0 : index
    %c0_186 = arith.constant 0 : index
    %324 = vector.load %arg13[%c0_185, %c0_186] : memref<8x32xf32, #tpu.memory_space<vmem>>, vector<8x32xf32>
    %cst_187 = arith.constant dense<0.000000e+00> : vector<8x128xf32>
    %325 = tpu.matmul %324, %263, %cst_187 {dimension_numbers = #tpu.dot_dimension_numbers<[1], [0], [0], [1], [0, 0, 1, 1], [], []>} : vector<8x32xf32>, vector<32x128xf32>, vector<8x128xf32> -> vector<8x128xf32>
    %326 = arith.addf %323, %325 : vector<8x128xf32>
    %327 = arith.negf %326 : vector<8x128xf32>
    %328 = math.exp %327 : vector<8x128xf32>
    %cst_188 = arith.constant 1.000000e+00 : f32
    %329 = vector.broadcast %cst_188 : f32 to vector<8x128xf32>
    %330 = arith.addf %329, %328 : vector<8x128xf32>
    %331 = arith.divf %329, %330 : vector<8x128xf32>
    %332 = vector.extract_strided_slice %331 {offsets = [0, 0], sizes = [8, 32], strides = [1, 1]} : vector<8x128xf32> to vector<8x32xf32>
    %333 = vector.extract_strided_slice %331 {offsets = [0, 32], sizes = [8, 32], strides = [1, 1]} : vector<8x128xf32> to vector<8x32xf32>
    %334 = vector.extract_strided_slice %331 {offsets = [0, 64], sizes = [8, 32], strides = [1, 1]} : vector<8x128xf32> to vector<8x32xf32>
    %cst_189 = arith.constant 2.000000e+00 : f32
    %335 = vector.broadcast %cst_189 : f32 to vector<8x32xf32>
    %336 = arith.mulf %335, %334 : vector<8x32xf32>
    %cst_190 = arith.constant 1.000000e+00 : f32
    %337 = vector.broadcast %cst_190 : f32 to vector<8x32xf32>
    %338 = arith.subf %336, %337 : vector<8x32xf32>
    %339 = vector.extract_strided_slice %331 {offsets = [0, 96], sizes = [8, 32], strides = [1, 1]} : vector<8x128xf32> to vector<8x32xf32>
    %c0_191 = arith.constant 0 : index
    %c0_192 = arith.constant 0 : index
    %340 = vector.load %arg14[%c0_191, %c0_192] : memref<8x32xf32, #tpu.memory_space<vmem>>, vector<8x32xf32>
    %341 = arith.mulf %333, %340 : vector<8x32xf32>
    %342 = arith.mulf %332, %338 : vector<8x32xf32>
    %343 = arith.addf %341, %342 : vector<8x32xf32>
    %344 = math.tanh %343 : vector<8x32xf32>
    %345 = arith.mulf %339, %344 : vector<8x32xf32>
    %c0_193 = arith.constant 0 : index
    %c0_194 = arith.constant 0 : index
    %346 = vector.load %arg14[%c0_193, %c0_194] : memref<8x32xf32, #tpu.memory_space<vmem>>, vector<8x32xf32>
    tpu.vector_store %arg14[%c0_193, %c0_194], %343 {strides = array<i32>} : memref<8x32xf32, #tpu.memory_space<vmem>>, vector<8x32xf32>,
    %c0_195 = arith.constant 0 : index
    %c0_196 = arith.constant 0 : index
    %347 = vector.load %arg13[%c0_195, %c0_196] : memref<8x32xf32, #tpu.memory_space<vmem>>, vector<8x32xf32>
    tpu.vector_store %arg13[%c0_195, %c0_196], %345 {strides = array<i32>} : memref<8x32xf32, #tpu.memory_space<vmem>>, vector<8x32xf32>,
    %c3_i32_197 = arith.constant 3 : i32
    %c8_i32_198 = arith.constant 8 : i32
    %348 = arith.muli %c3_i32_197, %c8_i32_198 : i32
    %349 = tpu.assume_multiple %348, 8 : i32
    %350 = arith.index_cast %349 : i32 to index
    %c0_199 = arith.constant 0 : index
    %351 = vector.load %arg11[%350, %c0_199] : memref<64x128xf32, #tpu.memory_space<vmem>>, vector<8x128xf32>
    %c0_200 = arith.constant 0 : index
    %c0_201 = arith.constant 0 : index
    %352 = vector.load %arg13[%c0_200, %c0_201] : memref<8x32xf32, #tpu.memory_space<vmem>>, vector<8x32xf32>
    %cst_202 = arith.constant dense<0.000000e+00> : vector<8x128xf32>
    %353 = tpu.matmul %352, %263, %cst_202 {dimension_numbers = #tpu.dot_dimension_numbers<[1], [0], [0], [1], [0, 0, 1, 1], [], []>} : vector<8x32xf32>, vector<32x128xf32>, vector<8x128xf32> -> vector<8x128xf32>
    %354 = arith.addf %351, %353 : vector<8x128xf32>
    %355 = arith.negf %354 : vector<8x128xf32>
    %356 = math.exp %355 : vector<8x128xf32>
    %cst_203 = arith.constant 1.000000e+00 : f32
    %357 = vector.broadcast %cst_203 : f32 to vector<8x128xf32>
    %358 = arith.addf %357, %356 : vector<8x128xf32>
    %359 = arith.divf %357, %358 : vector<8x128xf32>
    %360 = vector.extract_strided_slice %359 {offsets = [0, 0], sizes = [8, 32], strides = [1, 1]} : vector<8x128xf32> to vector<8x32xf32>
    %361 = vector.extract_strided_slice %359 {offsets = [0, 32], sizes = [8, 32], strides = [1, 1]} : vector<8x128xf32> to vector<8x32xf32>
    %362 = vector.extract_strided_slice %359 {offsets = [0, 64], sizes = [8, 32], strides = [1, 1]} : vector<8x128xf32> to vector<8x32xf32>
    %cst_204 = arith.constant 2.000000e+00 : f32
    %363 = vector.broadcast %cst_204 : f32 to vector<8x32xf32>
    %364 = arith.mulf %363, %362 : vector<8x32xf32>
    %cst_205 = arith.constant 1.000000e+00 : f32
    %365 = vector.broadcast %cst_205 : f32 to vector<8x32xf32>
    %366 = arith.subf %364, %365 : vector<8x32xf32>
    %367 = vector.extract_strided_slice %359 {offsets = [0, 96], sizes = [8, 32], strides = [1, 1]} : vector<8x128xf32> to vector<8x32xf32>
    %c0_206 = arith.constant 0 : index
    %c0_207 = arith.constant 0 : index
    %368 = vector.load %arg14[%c0_206, %c0_207] : memref<8x32xf32, #tpu.memory_space<vmem>>, vector<8x32xf32>
    %369 = arith.mulf %361, %368 : vector<8x32xf32>
    %370 = arith.mulf %360, %366 : vector<8x32xf32>
    %371 = arith.addf %369, %370 : vector<8x32xf32>
    %372 = math.tanh %371 : vector<8x32xf32>
    %373 = arith.mulf %367, %372 : vector<8x32xf32>
    %c0_208 = arith.constant 0 : index
    %c0_209 = arith.constant 0 : index
    %374 = vector.load %arg14[%c0_208, %c0_209] : memref<8x32xf32, #tpu.memory_space<vmem>>, vector<8x32xf32>
    tpu.vector_store %arg14[%c0_208, %c0_209], %371 {strides = array<i32>} : memref<8x32xf32, #tpu.memory_space<vmem>>, vector<8x32xf32>,
    %c0_210 = arith.constant 0 : index
    %c0_211 = arith.constant 0 : index
    %375 = vector.load %arg13[%c0_210, %c0_211] : memref<8x32xf32, #tpu.memory_space<vmem>>, vector<8x32xf32>
    tpu.vector_store %arg13[%c0_210, %c0_211], %373 {strides = array<i32>} : memref<8x32xf32, #tpu.memory_space<vmem>>, vector<8x32xf32>,
    %c4_i32_212 = arith.constant 4 : i32
    %c8_i32_213 = arith.constant 8 : i32
    %376 = arith.muli %c4_i32_212, %c8_i32_213 : i32
    %377 = tpu.assume_multiple %376, 8 : i32
    %378 = arith.index_cast %377 : i32 to index
    %c0_214 = arith.constant 0 : index
    %379 = vector.load %arg11[%378, %c0_214] : memref<64x128xf32, #tpu.memory_space<vmem>>, vector<8x128xf32>
    %c0_215 = arith.constant 0 : index
    %c0_216 = arith.constant 0 : index
    %380 = vector.load %arg13[%c0_215, %c0_216] : memref<8x32xf32, #tpu.memory_space<vmem>>, vector<8x32xf32>
    %cst_217 = arith.constant dense<0.000000e+00> : vector<8x128xf32>
    %381 = tpu.matmul %380, %263, %cst_217 {dimension_numbers = #tpu.dot_dimension_numbers<[1], [0], [0], [1], [0, 0, 1, 1], [], []>} : vector<8x32xf32>, vector<32x128xf32>, vector<8x128xf32> -> vector<8x128xf32>
    %382 = arith.addf %379, %381 : vector<8x128xf32>
    %383 = arith.negf %382 : vector<8x128xf32>
    %384 = math.exp %383 : vector<8x128xf32>
    %cst_218 = arith.constant 1.000000e+00 : f32
    %385 = vector.broadcast %cst_218 : f32 to vector<8x128xf32>
    %386 = arith.addf %385, %384 : vector<8x128xf32>
    %387 = arith.divf %385, %386 : vector<8x128xf32>
    %388 = vector.extract_strided_slice %387 {offsets = [0, 0], sizes = [8, 32], strides = [1, 1]} : vector<8x128xf32> to vector<8x32xf32>
    %389 = vector.extract_strided_slice %387 {offsets = [0, 32], sizes = [8, 32], strides = [1, 1]} : vector<8x128xf32> to vector<8x32xf32>
    %390 = vector.extract_strided_slice %387 {offsets = [0, 64], sizes = [8, 32], strides = [1, 1]} : vector<8x128xf32> to vector<8x32xf32>
    %cst_219 = arith.constant 2.000000e+00 : f32
    %391 = vector.broadcast %cst_219 : f32 to vector<8x32xf32>
    %392 = arith.mulf %391, %390 : vector<8x32xf32>
    %cst_220 = arith.constant 1.000000e+00 : f32
    %393 = vector.broadcast %cst_220 : f32 to vector<8x32xf32>
    %394 = arith.subf %392, %393 : vector<8x32xf32>
    %395 = vector.extract_strided_slice %387 {offsets = [0, 96], sizes = [8, 32], strides = [1, 1]} : vector<8x128xf32> to vector<8x32xf32>
    %c0_221 = arith.constant 0 : index
    %c0_222 = arith.constant 0 : index
    %396 = vector.load %arg14[%c0_221, %c0_222] : memref<8x32xf32, #tpu.memory_space<vmem>>, vector<8x32xf32>
    %397 = arith.mulf %389, %396 : vector<8x32xf32>
    %398 = arith.mulf %388, %394 : vector<8x32xf32>
    %399 = arith.addf %397, %398 : vector<8x32xf32>
    %400 = math.tanh %399 : vector<8x32xf32>
    %401 = arith.mulf %395, %400 : vector<8x32xf32>
    %c0_223 = arith.constant 0 : index
    %c0_224 = arith.constant 0 : index
    %402 = vector.load %arg14[%c0_223, %c0_224] : memref<8x32xf32, #tpu.memory_space<vmem>>, vector<8x32xf32>
    tpu.vector_store %arg14[%c0_223, %c0_224], %399 {strides = array<i32>} : memref<8x32xf32, #tpu.memory_space<vmem>>, vector<8x32xf32>,
    %c0_225 = arith.constant 0 : index
    %c0_226 = arith.constant 0 : index
    %403 = vector.load %arg13[%c0_225, %c0_226] : memref<8x32xf32, #tpu.memory_space<vmem>>, vector<8x32xf32>
    tpu.vector_store %arg13[%c0_225, %c0_226], %401 {strides = array<i32>} : memref<8x32xf32, #tpu.memory_space<vmem>>, vector<8x32xf32>,
    %c5_i32_227 = arith.constant 5 : i32
    %c8_i32_228 = arith.constant 8 : i32
    %404 = arith.muli %c5_i32_227, %c8_i32_228 : i32
    %405 = tpu.assume_multiple %404, 8 : i32
    %406 = arith.index_cast %405 : i32 to index
    %c0_229 = arith.constant 0 : index
    %407 = vector.load %arg11[%406, %c0_229] : memref<64x128xf32, #tpu.memory_space<vmem>>, vector<8x128xf32>
    %c0_230 = arith.constant 0 : index
    %c0_231 = arith.constant 0 : index
    %408 = vector.load %arg13[%c0_230, %c0_231] : memref<8x32xf32, #tpu.memory_space<vmem>>, vector<8x32xf32>
    %cst_232 = arith.constant dense<0.000000e+00> : vector<8x128xf32>
    %409 = tpu.matmul %408, %263, %cst_232 {dimension_numbers = #tpu.dot_dimension_numbers<[1], [0], [0], [1], [0, 0, 1, 1], [], []>} : vector<8x32xf32>, vector<32x128xf32>, vector<8x128xf32> -> vector<8x128xf32>
    %410 = arith.addf %407, %409 : vector<8x128xf32>
    %411 = arith.negf %410 : vector<8x128xf32>
    %412 = math.exp %411 : vector<8x128xf32>
    %cst_233 = arith.constant 1.000000e+00 : f32
    %413 = vector.broadcast %cst_233 : f32 to vector<8x128xf32>
    %414 = arith.addf %413, %412 : vector<8x128xf32>
    %415 = arith.divf %413, %414 : vector<8x128xf32>
    %416 = vector.extract_strided_slice %415 {offsets = [0, 0], sizes = [8, 32], strides = [1, 1]} : vector<8x128xf32> to vector<8x32xf32>
    %417 = vector.extract_strided_slice %415 {offsets = [0, 32], sizes = [8, 32], strides = [1, 1]} : vector<8x128xf32> to vector<8x32xf32>
    %418 = vector.extract_strided_slice %415 {offsets = [0, 64], sizes = [8, 32], strides = [1, 1]} : vector<8x128xf32> to vector<8x32xf32>
    %cst_234 = arith.constant 2.000000e+00 : f32
    %419 = vector.broadcast %cst_234 : f32 to vector<8x32xf32>
    %420 = arith.mulf %419, %418 : vector<8x32xf32>
    %cst_235 = arith.constant 1.000000e+00 : f32
    %421 = vector.broadcast %cst_235 : f32 to vector<8x32xf32>
    %422 = arith.subf %420, %421 : vector<8x32xf32>
    %423 = vector.extract_strided_slice %415 {offsets = [0, 96], sizes = [8, 32], strides = [1, 1]} : vector<8x128xf32> to vector<8x32xf32>
    %c0_236 = arith.constant 0 : index
    %c0_237 = arith.constant 0 : index
    %424 = vector.load %arg14[%c0_236, %c0_237] : memref<8x32xf32, #tpu.memory_space<vmem>>, vector<8x32xf32>
    %425 = arith.mulf %417, %424 : vector<8x32xf32>
    %426 = arith.mulf %416, %422 : vector<8x32xf32>
    %427 = arith.addf %425, %426 : vector<8x32xf32>
    %428 = math.tanh %427 : vector<8x32xf32>
    %429 = arith.mulf %423, %428 : vector<8x32xf32>
    %c0_238 = arith.constant 0 : index
    %c0_239 = arith.constant 0 : index
    %430 = vector.load %arg14[%c0_238, %c0_239] : memref<8x32xf32, #tpu.memory_space<vmem>>, vector<8x32xf32>
    tpu.vector_store %arg14[%c0_238, %c0_239], %427 {strides = array<i32>} : memref<8x32xf32, #tpu.memory_space<vmem>>, vector<8x32xf32>,
    %c0_240 = arith.constant 0 : index
    %c0_241 = arith.constant 0 : index
    %431 = vector.load %arg13[%c0_240, %c0_241] : memref<8x32xf32, #tpu.memory_space<vmem>>, vector<8x32xf32>
    tpu.vector_store %arg13[%c0_240, %c0_241], %429 {strides = array<i32>} : memref<8x32xf32, #tpu.memory_space<vmem>>, vector<8x32xf32>,
    %c6_i32_242 = arith.constant 6 : i32
    %c8_i32_243 = arith.constant 8 : i32
    %432 = arith.muli %c6_i32_242, %c8_i32_243 : i32
    %433 = tpu.assume_multiple %432, 8 : i32
    %434 = arith.index_cast %433 : i32 to index
    %c0_244 = arith.constant 0 : index
    %435 = vector.load %arg11[%434, %c0_244] : memref<64x128xf32, #tpu.memory_space<vmem>>, vector<8x128xf32>
    %c0_245 = arith.constant 0 : index
    %c0_246 = arith.constant 0 : index
    %436 = vector.load %arg13[%c0_245, %c0_246] : memref<8x32xf32, #tpu.memory_space<vmem>>, vector<8x32xf32>
    %cst_247 = arith.constant dense<0.000000e+00> : vector<8x128xf32>
    %437 = tpu.matmul %436, %263, %cst_247 {dimension_numbers = #tpu.dot_dimension_numbers<[1], [0], [0], [1], [0, 0, 1, 1], [], []>} : vector<8x32xf32>, vector<32x128xf32>, vector<8x128xf32> -> vector<8x128xf32>
    %438 = arith.addf %435, %437 : vector<8x128xf32>
    %439 = arith.negf %438 : vector<8x128xf32>
    %440 = math.exp %439 : vector<8x128xf32>
    %cst_248 = arith.constant 1.000000e+00 : f32
    %441 = vector.broadcast %cst_248 : f32 to vector<8x128xf32>
    %442 = arith.addf %441, %440 : vector<8x128xf32>
    %443 = arith.divf %441, %442 : vector<8x128xf32>
    %444 = vector.extract_strided_slice %443 {offsets = [0, 0], sizes = [8, 32], strides = [1, 1]} : vector<8x128xf32> to vector<8x32xf32>
    %445 = vector.extract_strided_slice %443 {offsets = [0, 32], sizes = [8, 32], strides = [1, 1]} : vector<8x128xf32> to vector<8x32xf32>
    %446 = vector.extract_strided_slice %443 {offsets = [0, 64], sizes = [8, 32], strides = [1, 1]} : vector<8x128xf32> to vector<8x32xf32>
    %cst_249 = arith.constant 2.000000e+00 : f32
    %447 = vector.broadcast %cst_249 : f32 to vector<8x32xf32>
    %448 = arith.mulf %447, %446 : vector<8x32xf32>
    %cst_250 = arith.constant 1.000000e+00 : f32
    %449 = vector.broadcast %cst_250 : f32 to vector<8x32xf32>
    %450 = arith.subf %448, %449 : vector<8x32xf32>
    %451 = vector.extract_strided_slice %443 {offsets = [0, 96], sizes = [8, 32], strides = [1, 1]} : vector<8x128xf32> to vector<8x32xf32>
    %c0_251 = arith.constant 0 : index
    %c0_252 = arith.constant 0 : index
    %452 = vector.load %arg14[%c0_251, %c0_252] : memref<8x32xf32, #tpu.memory_space<vmem>>, vector<8x32xf32>
    %453 = arith.mulf %445, %452 : vector<8x32xf32>
    %454 = arith.mulf %444, %450 : vector<8x32xf32>
    %455 = arith.addf %453, %454 : vector<8x32xf32>
    %456 = math.tanh %455 : vector<8x32xf32>
    %457 = arith.mulf %451, %456 : vector<8x32xf32>
    %c0_253 = arith.constant 0 : index
    %c0_254 = arith.constant 0 : index
    %458 = vector.load %arg14[%c0_253, %c0_254] : memref<8x32xf32, #tpu.memory_space<vmem>>, vector<8x32xf32>
    tpu.vector_store %arg14[%c0_253, %c0_254], %455 {strides = array<i32>} : memref<8x32xf32, #tpu.memory_space<vmem>>, vector<8x32xf32>,
    %c0_255 = arith.constant 0 : index
    %c0_256 = arith.constant 0 : index
    %459 = vector.load %arg13[%c0_255, %c0_256] : memref<8x32xf32, #tpu.memory_space<vmem>>, vector<8x32xf32>
    tpu.vector_store %arg13[%c0_255, %c0_256], %457 {strides = array<i32>} : memref<8x32xf32, #tpu.memory_space<vmem>>, vector<8x32xf32>,
    %c7_i32_257 = arith.constant 7 : i32
    %c8_i32_258 = arith.constant 8 : i32
    %460 = arith.muli %c7_i32_257, %c8_i32_258 : i32
    %461 = tpu.assume_multiple %460, 8 : i32
    %462 = arith.index_cast %461 : i32 to index
    %c0_259 = arith.constant 0 : index
    %463 = vector.load %arg11[%462, %c0_259] : memref<64x128xf32, #tpu.memory_space<vmem>>, vector<8x128xf32>
    %c0_260 = arith.constant 0 : index
    %c0_261 = arith.constant 0 : index
    %464 = vector.load %arg13[%c0_260, %c0_261] : memref<8x32xf32, #tpu.memory_space<vmem>>, vector<8x32xf32>
    %cst_262 = arith.constant dense<0.000000e+00> : vector<8x128xf32>
    %465 = tpu.matmul %464, %263, %cst_262 {dimension_numbers = #tpu.dot_dimension_numbers<[1], [0], [0], [1], [0, 0, 1, 1], [], []>} : vector<8x32xf32>, vector<32x128xf32>, vector<8x128xf32> -> vector<8x128xf32>
    %466 = arith.addf %463, %465 : vector<8x128xf32>
    %467 = arith.negf %466 : vector<8x128xf32>
    %468 = math.exp %467 : vector<8x128xf32>
    %cst_263 = arith.constant 1.000000e+00 : f32
    %469 = vector.broadcast %cst_263 : f32 to vector<8x128xf32>
    %470 = arith.addf %469, %468 : vector<8x128xf32>
    %471 = arith.divf %469, %470 : vector<8x128xf32>
    %472 = vector.extract_strided_slice %471 {offsets = [0, 0], sizes = [8, 32], strides = [1, 1]} : vector<8x128xf32> to vector<8x32xf32>
    %473 = vector.extract_strided_slice %471 {offsets = [0, 32], sizes = [8, 32], strides = [1, 1]} : vector<8x128xf32> to vector<8x32xf32>
    %474 = vector.extract_strided_slice %471 {offsets = [0, 64], sizes = [8, 32], strides = [1, 1]} : vector<8x128xf32> to vector<8x32xf32>
    %cst_264 = arith.constant 2.000000e+00 : f32
    %475 = vector.broadcast %cst_264 : f32 to vector<8x32xf32>
    %476 = arith.mulf %475, %474 : vector<8x32xf32>
    %cst_265 = arith.constant 1.000000e+00 : f32
    %477 = vector.broadcast %cst_265 : f32 to vector<8x32xf32>
    %478 = arith.subf %476, %477 : vector<8x32xf32>
    %479 = vector.extract_strided_slice %471 {offsets = [0, 96], sizes = [8, 32], strides = [1, 1]} : vector<8x128xf32> to vector<8x32xf32>
    %c0_266 = arith.constant 0 : index
    %c0_267 = arith.constant 0 : index
    %480 = vector.load %arg14[%c0_266, %c0_267] : memref<8x32xf32, #tpu.memory_space<vmem>>, vector<8x32xf32>
    %481 = arith.mulf %473, %480 : vector<8x32xf32>
    %482 = arith.mulf %472, %478 : vector<8x32xf32>
    %483 = arith.addf %481, %482 : vector<8x32xf32>
    %484 = math.tanh %483 : vector<8x32xf32>
    %485 = arith.mulf %479, %484 : vector<8x32xf32>
    %c0_268 = arith.constant 0 : index
    %c0_269 = arith.constant 0 : index
    %486 = vector.load %arg14[%c0_268, %c0_269] : memref<8x32xf32, #tpu.memory_space<vmem>>, vector<8x32xf32>
    tpu.vector_store %arg14[%c0_268, %c0_269], %483 {strides = array<i32>} : memref<8x32xf32, #tpu.memory_space<vmem>>, vector<8x32xf32>,
    %c0_270 = arith.constant 0 : index
    %c0_271 = arith.constant 0 : index
    %487 = vector.load %arg13[%c0_270, %c0_271] : memref<8x32xf32, #tpu.memory_space<vmem>>, vector<8x32xf32>
    tpu.vector_store %arg13[%c0_270, %c0_271], %485 {strides = array<i32>} : memref<8x32xf32, #tpu.memory_space<vmem>>, vector<8x32xf32>,
    %c8_i32_272 = arith.constant 8 : i32
    %c0_273 = arith.constant 0 : index
    %c0_274 = arith.constant 0 : index
    %488 = vector.load %arg13[%c0_273, %c0_274] : memref<8x32xf32, #tpu.memory_space<vmem>>, vector<8x32xf32>
    %c0_275 = arith.constant 0 : index
    %c0_276 = arith.constant 0 : index
    %489 = vector.load %arg8[%c0_275, %c0_276] : memref<32x4xf32, #tpu.memory_space<vmem>>, vector<32x4xf32>
    %cst_277 = arith.constant dense<0.000000e+00> : vector<8x4xf32>
    %490 = tpu.matmul %488, %489, %cst_277 {dimension_numbers = #tpu.dot_dimension_numbers<[1], [0], [0], [1], [0, 0, 1, 1], [], []>} : vector<8x32xf32>, vector<32x4xf32>, vector<8x4xf32> -> vector<8x4xf32>
    %c0_278 = arith.constant 0 : index
    %c0_279 = arith.constant 0 : index
    %491 = vector.load %arg9[%c0_278, %c0_279] : memref<1x4xf32, #tpu.memory_space<vmem>>, vector<1x4xf32>
    %492 = vector.broadcast %491 : vector<1x4xf32> to vector<8x4xf32>
    %493 = arith.addf %490, %492 : vector<8x4xf32>
    %c0_280 = arith.constant 0 : index
    %c0_281 = arith.constant 0 : index
    %494 = vector.load %arg10[%c0_280, %c0_281] : memref<8x4xf32, #tpu.memory_space<vmem>>, vector<8x4xf32>
    tpu.vector_store %arg10[%c0_280, %c0_281], %493 {strides = array<i32>} : memref<8x4xf32, #tpu.memory_space<vmem>>, vector<8x4xf32>,
    return
  }
  func.func @transform_0(%arg0: i32) -> (i32, i32) {
    %c0_i32 = arith.constant 0 : i32
    %c0_i32_0 = arith.constant 0 : i32
    %c0_i32_1 = arith.constant 0 : i32
    return %c0_i32, %c0_i32_0 : i32, i32
  }
  func.func @transform_1(%arg0: i32) -> (i32, i32) {
    %c0_i32 = arith.constant 0 : i32
    %c0_i32_0 = arith.constant 0 : i32
    %c0_i32_1 = arith.constant 0 : i32
    return %c0_i32, %c0_i32_0 : i32, i32
  }
  func.func @transform_2(%arg0: i32) -> (i32, i32) {
    %c0_i32 = arith.constant 0 : i32
    %c0_i32_0 = arith.constant 0 : i32
    %c0_i32_1 = arith.constant 0 : i32
    return %c0_i32, %c0_i32_0 : i32, i32
  }
  func.func @transform_3(%arg0: i32) -> (i32, i32) {
    %c0_i32 = arith.constant 0 : i32
    %c0_i32_0 = arith.constant 0 : i32
    %c0_i32_1 = arith.constant 0 : i32
    return %c0_i32, %c0_i32_0 : i32, i32
  }
  func.func @transform_4(%arg0: i32) -> (i32, i32) {
    %c0_i32 = arith.constant 0 : i32
    %c0_i32_0 = arith.constant 0 : i32
    %c0_i32_1 = arith.constant 0 : i32
    return %c0_i32, %c0_i32_0 : i32, i32
  }
  func.func @transform_5(%arg0: i32) -> (i32, i32) {
    %c0_i32 = arith.constant 0 : i32
    %c0_i32_0 = arith.constant 0 : i32
    %c0_i32_1 = arith.constant 0 : i32
    return %c0_i32, %c0_i32_0 : i32, i32
  }
  func.func @transform_6(%arg0: i32) -> (i32, i32) {
    %c0_i32 = arith.constant 0 : i32
    %c0_i32_0 = arith.constant 0 : i32
    %c0_i32_1 = arith.constant 0 : i32
    return %c0_i32, %c0_i32_0 : i32, i32
  }
  func.func @transform_7(%arg0: i32) -> (i32, i32) {
    %c0_i32 = arith.constant 0 : i32
    %c0_i32_0 = arith.constant 0 : i32
    %c0_i32_1 = arith.constant 0 : i32
    return %c0_i32, %c0_i32_0 : i32, i32
  }
  func.func @transform_8(%arg0: i32) -> (i32, i32) {
    %c0_i32 = arith.constant 0 : i32
    %c0_i32_0 = arith.constant 0 : i32
    %c0_i32_1 = arith.constant 0 : i32
    return %c0_i32, %c0_i32_0 : i32, i32
  }
  func.func @transform_9(%arg0: i32) -> (i32, i32) {
    %c0_i32 = arith.constant 0 : i32
    %c0_i32_0 = arith.constant 0 : i32
    %c0_i32_1 = arith.constant 0 : i32
    return %c0_i32, %c0_i32_0 : i32, i32
  }
}

</mosaic_0001>

<bundles_post_ra>
// kernel: lstm_parkinsons_forward.1
= control target key start
LH: loop header
LB: loop body
LE: loop exit
PB: predicated region body
PF: predicated region fallthrough
CT: control target
= control target key end

     0   :  { %vm49_vm0 = vcmask 130048   ;;  %v2939_v0 = vmov 0.0|0.0   ;;  %vm2940_vm1 = vmmov 0   ;;  %v2941_v4 = vmov 0.0   ;;  %s2942_s25 = smov 64   ;;  %s2944_s26 = smov 96   ;;  %s3426_s1 = inlined_call_operand.vmem [shape: f32[16,128], index: 1, kind: input, shape index: {}]   ;;  %s3427_s2 = inlined_call_operand.vmem [shape: f32[32,128], index: 2, kind: input, shape index: {}]   ;;  %s3428_s0 = inlined_call_operand.vmem [shape: f32[64,16], index: 0, kind: input, shape index: {}]   ;;  %s3429_s3 = inlined_call_operand.vmem [shape: f32[1,128], index: 3, kind: input, shape index: {}]   ;;  %s3430_s4 = inlined_call_operand.vmem [shape: f32[32,128], index: 4, kind: input, shape index: {}]   ;;  %s3431_s5 = inlined_call_operand.vmem [shape: f32[32,128], index: 5, kind: input, shape index: {}]   ;;  %s3432_s6 = inlined_call_operand.vmem [shape: f32[1,128], index: 6, kind: input, shape index: {}]   ;;  %s3433_s7 = inlined_call_operand.vmem [shape: f32[32,4], index: 7, kind: input, shape index: {}]   ;;  %s3434_s8 = inlined_call_operand.vmem [shape: f32[1,4], index: 8, kind: input, shape index: {}]   ;;  %s3435_s9 = inlined_call_operand.vmem [shape: f32[8,4], index: 9, kind: output, shape index: {}]  }
   0x1   :  { %2727 = vmatprep.subr.bf16.mxu1 %v2939_v0  ;;  %v40_v1 = vld [vmem:[%s3426_s1] sm:$0xff]  ;;  %v41_v2 = vld [vmem:[%s3426_s1 + $0x8] sm:$0xff]  ;;  %2524 = vmatprep.mubr.msk.f32.mxu1 %vm2940_vm1, %v2941_v4  ;;  %vm187_vm2 = vcmask 261120   ;;  %v192_v9 = vld [vmem:[%s3427_s2 + $0x10] sm:$0xff]  ;;  %vm2319_vm3 = vcmask 31744  }
   0x2   :  { %v190_v3 = vld [vmem:[%s3427_s2] sm:$0xff]  ;;  %v2723_v5 = vpack.c.bf16 %v41_v2, %v40_v1  ;;  %v191_v6 = vld [vmem:[%s3427_s2 + $0x8] sm:$0xff]  ;;  %188 = vst.msk [vmem:[#allocation4] sm:$0xff] %vm187_vm2, %v2941_v4  ;;  %189 = vst.msk [vmem:[#allocation5] sm:$0xff] %vm187_vm2, %v2941_v4 }
   0x3   :  { %v32_v7 = vld [vmem:[%s3428_s0] sm:$0xff]  ;;  %v3017_v8 = vpack.c.bf16 %v191_v6, %v190_v3  ;;  %v193_v10 = vld [vmem:[%s3427_s2 + $0x18] sm:$0xff]  ;;  %v33_v11 = vld [vmem:[%s3428_s0 + $0x8] sm:$0xff] }
   0x4   :  { %2504 = vmatprep.mubr.msk.f32.mxu0 %vm49_vm0, %v32_v7  ;;  %2724 = vmatprep.subr.bf16.mxu0 %v2723_v5  ;;  %v3030_v12 = vpack.c.bf16 %v193_v10, %v192_v9  ;;  %v3051_v14 = vld [vmem:[%s3429_s3] ss:$0 sm:$0xff]  ;;  %s2943_s3 = smov 32   ;;  %v34_v58 = vld [vmem:[%s3428_s0 + $0x10] sm:$0xff]  ;;  %v35_v59 = vld [vmem:[%s3428_s0 + $0x18] sm:$0xff] }
   0x5   :  { %2729 = vmatpush3.bf16.msra.mxu1 %v3017_v8  ;;  %2726 = vmatpush3.bf16.msra.mxu0 %v2723_v5  ;;  %v36_v60 = vld [vmem:[%s3428_s0 + $0x20] sm:$0xff]  ;;  %v37_v61 = vld [vmem:[%s3428_s0 + $0x28] sm:$0xff]  ;;  %v38_v62 = vld [vmem:[%s3428_s0 + $0x30] sm:$0xff] }
   0x6   :  { %2730 = vmatprep.subr.bf16.mxu1 %v2939_v0  ;;  %2739 = vmatprep.subr.bf16.mxu0 %v2939_v0  ;;  %v39_v63 = vld [vmem:[%s3428_s0 + $0x38] sm:$0xff] }
   0x8   :  { %2505 = vmatmul.mubr.msk.f32.vlgmr.msra.gmra.mrb[0].mxu0 %vm49_vm0, %v33_v11 }
   0x9   :  { %2732 = vmatpush3.bf16.msra.mxu1 %v3030_v12  ;;  %v195_v13 = vld [vmem:[#allocation4] sm:$0xff]  ;;  %2741 = vmatpush3.bf16.msra.mxu0 %v3017_v8  ;;  %v278_v27 = vld [vmem:[#allocation5] sm:$0xff] }
   0xa   :  { %2733 = vmatprep.subr.bf16.mxu1 %v2939_v0  ;;  %2742 = vmatprep.subr.bf16.mxu0 %v2939_v0 }
   0xb   :  { %2507 = vmatprep.mubr.msk.f32.mxu0 %vm49_vm0, %v34_v58 }
   0xc   :  { %2525 = vmatmul.mubr.msk.f32.vlgmr.msra.gmra.mrb[0].mxu1 %vm187_vm2, %v195_v13  ;;  %2508 = vmatmul.mubr.msk.f32.gmra.mrb[2].mxu0 %vm49_vm0, %v35_v59 }
   0xd   :  { %2735 = vmatpush3.bf16.msra.mxu1 %v3017_v8  ;;  %2535 = vmatprep.mubr.msk.f32.mxu1 %vm2940_vm1, %v2941_v4 }
   0xe   :  { %2736 = vmatprep.subr.bf16.mxu1 %v2939_v0  ;;  %2744 = vmatpush3.bf16.msra.mxu0 %v3030_v12 }
   0xf   :  { %2751 = vmatprep.subr.bf16.mxu0 %v2939_v0  ;;  %2510 = vmatprep.mubr.msk.f32.mxu0 %vm49_vm0, %v36_v60 }
  0x10   :  { %2511 = vmatmul.mubr.msk.f32.gmra.mrb[4].mxu0 %vm49_vm0, %v37_v61 }
  0x11   :  { %2738 = vmatpush3.bf16.msra.mxu1 %v3030_v12  ;;  %2513 = vmatprep.mubr.msk.f32.mxu0 %vm49_vm0, %v38_v62 }
  0x12   :  { %2745 = vmatprep.subr.bf16.mxu1 %v2939_v0 }
  0x14   :  { %2514 = vmatmul.mubr.msk.f32.gmra.mrb[6].mxu0 %vm49_vm0, %v39_v63 }
  0x15   :  { %2546 = vmatprep.mubr.msk.f32.mxu0 %vm2940_vm1, %v2941_v4 }
  0xdb   :  { %v2506_v15 = vpop.f32.mrb[0].mxu0 }
  0xdc   :  { %v140_v16 = vpop.f32.mrb[1].mxu0  ;;  %v146_v41 = vadd.f32 %v2506_v15, %v3051_v14 }
  0xdd   :  { %v141_v17 = vadd.f32 %v3051_v14, %v140_v16 }
  0xdf   :  { %v265_v18 = vpop.f32.mrb[0].mxu1  ;;  %v2509_v6 = vpop.f32.mrb[2].mxu0 }
  0xe0   :  { %v269_v19 = vadd.f32 %v265_v18, %v141_v17  ;;  %v2526_v20 = vpop.f32.mrb[1].mxu1  ;;  %v150_v7 = vpop.f32.mrb[3].mxu0 }
  0xe1   :  { %v151_v17 = vadd.f32 %v3051_v14, %v150_v7 }
  0xe2   :  { %v2335_v21 = vmul.f32 -1.442695, %v269_v19 }
  0xe3   :  { %v3105_v9 = vpop.f32.mrb[4].mxu0 }
  0xe4   :  { %2843 = vpow2.f32 %v2335_v21  ;;  %v3107_v10 = vpop.f32.mrb[5].mxu0 }
  0xe5   :  { %v161_v63 = vadd.f32 %v3051_v14, %v3107_v10 }
  0xe7   :  { %v3118_v15 = vpop.f32.mrb[6].mxu0 }
  0xe8   :  { %v3120_v16 = vpop.f32.mrb[7].mxu0 }
  0xee   :  { %v2844_v22 = vpop.eup %2843 }
  0xef   :  { %v273_v23 = vadd.f32 1.0, %v2844_v22 }
  0xf1   :  { %2845 = vrcp.f32 %v273_v23 }
  0xfb   :  { %v2846_v24 = vpop.eup %2845 }
  0xfc   :  { %v276_v25 = vmul.f32 2.0, %v2846_v24 }
  0xfe   :  { %v2336_v26 = vadd.f32 -1.0, %v276_v25 }
 0x100   :  { %285 = vrot.lane.b32.xlu0 %v2336_v26, %s2942_s25 }
 0x104   :  { %280 = vrot.lane.b32.xlu0 %v278_v27, %s2943_s3 }
 0x172   :  { %v286_v28 = vpop.permute.xlu0 %285 }
 0x173   :  { %v288_v29 = vmul.f32 %v2846_v24, %v286_v28 }
 0x175   :  { %290 = vrot.lane.b32.xlu1 %v288_v29, %s2943_s3 }
 0x176   :  { %v281_v30 = vpop.permute.xlu0 %280 }
 0x177   :  { %v283_v31 = vmul.f32 %v2846_v24, %v281_v30 }
 0x1e7   :  { %v291_v32 = vpop.permute.xlu1 %290 }
 0x1e8   :  { %v293_v33 = vadd.f32 %v291_v32, %v283_v31 }
 0x1ea   :  { %2847 = vtanh.f32 %v293_v33 }
 0x1f4   :  { %v2848_v34 = vpop.eup %2847 }
 0x1f5   :  { %296 = vrot.lane.b32.xlu1 %v2848_v34, %s2942_s25 }
 0x1f9   :  { %301 = vrot.lane.b32.xlu1 %v293_v33, %s2944_s26 }
 0x267   :  { %v297_v35 = vpop.permute.xlu1 %296 }
 0x268   :  { %v299_v36 = vmul.f32 %v2846_v24, %v297_v35 }
 0x26a   :  { %306 = vrot.lane.b32.xlu0 %v299_v36, %s2943_s3 }
 0x26b   :  { %v302_v37 = vpop.permute.xlu1 %301 }
 0x26c   :  { %304 = vst.msk [vmem:[#allocation5] sm:$0xff] %vm187_vm2, %v302_v37 }
 0x273   :  { %v396_v38 = vld [vmem:[#allocation5] sm:$0xff] }
 0x274   :  { %398 = vrot.lane.b32.xlu1 %v396_v38, %s2943_s3 }
 0x2dc   :  { %v307_v39 = vpop.permute.xlu0 %306 }
 0x2dd   :  { %309 = vst.msk [vmem:[#allocation4] sm:$0xff] %vm187_vm2, %v307_v39  ;;  %310 = vst.msk [vmem:[#allocation3] sm:$0xff] %vm187_vm2, %v307_v39 }
 0x2e4   :  { %v313_v40 = vld [vmem:[#allocation4] sm:$0xff] }
 0x2e5   :  { %2536 = vmatmul.mubr.msk.f32.vlgmr.msra.gmra.mrb[2].mxu1 %vm187_vm2, %v313_v40  ;;  %v156_v40 = vadd.f32 %v2509_v6, %v3051_v14 }
 0x2e6   :  { %2747 = vmatpush3.bf16.msra.mxu1 %v3017_v8  ;;  %2557 = vmatprep.mubr.msk.f32.mxu1 %vm2940_vm1, %v2941_v4  ;;  %v399_v53 = vpop.permute.xlu1 %398 }
 0x2e7   :  { %2748 = vmatprep.subr.bf16.mxu1 %v2939_v0 }
 0x2ea   :  { %2750 = vmatpush3.bf16.msra.mxu1 %v3030_v12 }
 0x2eb   :  { %2757 = vmatprep.subr.bf16.mxu1 %v2939_v0 }
 0x3b8   :  { %v383_v42 = vpop.f32.mrb[2].mxu1 }
 0x3b9   :  { %v387_v43 = vadd.f32 %v383_v42, %v146_v41  ;;  %v2537_v44 = vpop.f32.mrb[3].mxu1 }
 0x3bb   :  { %v2338_v45 = vmul.f32 -1.442695, %v387_v43 }
 0x3bd   :  { %2849 = vpow2.f32 %v2338_v45 }
 0x3c7   :  { %v2850_v46 = vpop.eup %2849 }
 0x3c8   :  { %v391_v47 = vadd.f32 1.0, %v2850_v46 }
 0x3ca   :  { %2851 = vrcp.f32 %v391_v47 }
 0x3d4   :  { %v2852_v48 = vpop.eup %2851 }
 0x3d5   :  { %v394_v49 = vmul.f32 2.0, %v2852_v48  ;;  %v401_v54 = vmul.f32 %v2852_v48, %v399_v53 }
 0x3d7   :  { %v2339_v50 = vadd.f32 -1.0, %v394_v49 }
 0x3d9   :  { %403 = vrot.lane.b32.xlu0 %v2339_v50, %s2942_s25 }
 0x44b   :  { %v404_v51 = vpop.permute.xlu0 %403 }
 0x44c   :  { %v406_v52 = vmul.f32 %v2852_v48, %v404_v51 }
 0x44e   :  { %408 = vrot.lane.b32.xlu0 %v406_v52, %s2943_s3 }
 0x4c0   :  { %v409_v55 = vpop.permute.xlu0 %408 }
 0x4c1   :  { %v411_v56 = vadd.f32 %v409_v55, %v401_v54 }
 0x4c3   :  { %2853 = vtanh.f32 %v411_v56 }
 0x4cd   :  { %v2854_v57 = vpop.eup %2853 }
 0x4ce   :  { %414 = vrot.lane.b32.xlu1 %v2854_v57, %s2942_s25 }
 0x4d2   :  { %419 = vrot.lane.b32.xlu1 %v411_v56, %s2944_s26 }
 0x540   :  { %v415_v1 = vpop.permute.xlu1 %414 }
 0x541   :  { %v417_v2 = vmul.f32 %v2852_v48, %v415_v1 }
 0x543   :  { %424 = vrot.lane.b32.xlu0 %v417_v2, %s2943_s3 }
 0x544   :  { %v420_v3 = vpop.permute.xlu1 %419 }
 0x545   :  { %422 = vst.msk [vmem:[#allocation5] sm:$0xff] %vm187_vm2, %v420_v3 }
 0x54c   :  { %v515_v5 = vld [vmem:[#allocation5] sm:$0xff] }
 0x54d   :  { %517 = vrot.lane.b32.xlu1 %v515_v5, %s2943_s3 }
 0x5b5   :  { %v425_v11 = vpop.permute.xlu0 %424 }
 0x5b6   :  { %427 = vst.msk [vmem:[#allocation4] sm:$0xff] %vm187_vm2, %v425_v11  ;;  %429 = vst.msk [vmem:[#allocation3 + $0x8] sm:$0xff] %vm187_vm2, %v425_v11 }
 0x5bd   :  { %v432_v13 = vld [vmem:[#allocation4] sm:$0xff] }
 0x5be   :  { %2547 = vmatmul.mubr.msk.f32.vlgmr.msra.gmra.mrb[8].mxu0 %vm187_vm2, %v432_v13 }
 0x5bf   :  { %2753 = vmatpush3.bf16.msra.mxu0 %v3017_v8  ;;  %2568 = vmatprep.mubr.msk.f32.mxu0 %vm2940_vm1, %v2941_v4  ;;  %v518_v29 = vpop.permute.xlu1 %517 }
 0x5c0   :  { %2754 = vmatprep.subr.bf16.mxu0 %v2939_v0 }
 0x5c3   :  { %2756 = vmatpush3.bf16.msra.mxu0 %v3030_v12 }
 0x5c4   :  { %2763 = vmatprep.subr.bf16.mxu0 %v2939_v0 }
 0x691   :  { %v502_v18 = vpop.f32.mrb[8].mxu0 }
 0x692   :  { %v506_v19 = vadd.f32 %v502_v18, %v151_v17  ;;  %v2548_v20 = vpop.f32.mrb[9].mxu0 }
 0x694   :  { %v2341_v21 = vmul.f32 -1.442695, %v506_v19 }
 0x696   :  { %2855 = vpow2.f32 %v2341_v21 }
 0x6a0   :  { %v2856_v22 = vpop.eup %2855 }
 0x6a1   :  { %v510_v23 = vadd.f32 1.0, %v2856_v22 }
 0x6a3   :  { %2857 = vrcp.f32 %v510_v23 }
 0x6ad   :  { %v2858_v24 = vpop.eup %2857 }
 0x6ae   :  { %v513_v25 = vmul.f32 2.0, %v2858_v24  ;;  %v520_v30 = vmul.f32 %v2858_v24, %v518_v29 }
 0x6b0   :  { %v2342_v26 = vadd.f32 -1.0, %v513_v25 }
 0x6b2   :  { %522 = vrot.lane.b32.xlu0 %v2342_v26, %s2942_s25 }
 0x724   :  { %v523_v27 = vpop.permute.xlu0 %522 }
 0x725   :  { %v525_v28 = vmul.f32 %v2858_v24, %v523_v27 }
 0x727   :  { %527 = vrot.lane.b32.xlu0 %v525_v28, %s2943_s3 }
 0x799   :  { %v528_v31 = vpop.permute.xlu0 %527 }
 0x79a   :  { %v530_v32 = vadd.f32 %v528_v31, %v520_v30  ;;  %v166_v30 = vadd.f32 %v3105_v9, %v3051_v14 }
 0x79c   :  { %2859 = vtanh.f32 %v530_v32 }
 0x7a6   :  { %v2860_v33 = vpop.eup %2859 }
 0x7a7   :  { %533 = vrot.lane.b32.xlu1 %v2860_v33, %s2942_s25 }
 0x7ab   :  { %538 = vrot.lane.b32.xlu1 %v530_v32, %s2944_s26 }
 0x819   :  { %v534_v34 = vpop.permute.xlu1 %533 }
 0x81a   :  { %v536_v35 = vmul.f32 %v2858_v24, %v534_v34 }
 0x81c   :  { %543 = vrot.lane.b32.xlu0 %v536_v35, %s2943_s3 }
 0x81d   :  { %v539_v36 = vpop.permute.xlu1 %538 }
 0x81e   :  { %541 = vst.msk [vmem:[#allocation5] sm:$0xff] %vm187_vm2, %v539_v36 }
 0x825   :  { %v634_v37 = vld [vmem:[#allocation5] sm:$0xff] }
 0x826   :  { %636 = vrot.lane.b32.xlu1 %v634_v37, %s2943_s3 }
 0x88e   :  { %v544_v38 = vpop.permute.xlu0 %543 }
 0x88f   :  { %546 = vst.msk [vmem:[#allocation4] sm:$0xff] %vm187_vm2, %v544_v38  ;;  %548 = vst.msk [vmem:[#allocation3 + $0x10] sm:$0xff] %vm187_vm2, %v544_v38 }
 0x896   :  { %v551_v39 = vld [vmem:[#allocation4] sm:$0xff] }
 0x897   :  { %2558 = vmatmul.mubr.msk.f32.vlgmr.msra.gmra.mrb[4].mxu1 %vm187_vm2, %v551_v39 }
 0x898   :  { %2759 = vmatpush3.bf16.msra.mxu1 %v3017_v8  ;;  %2579 = vmatprep.mubr.msk.f32.mxu1 %vm2940_vm1, %v2941_v4  ;;  %v637_v52 = vpop.permute.xlu1 %636 }
 0x899   :  { %2760 = vmatprep.subr.bf16.mxu1 %v2939_v0 }
 0x89c   :  { %2762 = vmatpush3.bf16.msra.mxu1 %v3030_v12 }
 0x89d   :  { %2769 = vmatprep.subr.bf16.mxu1 %v2939_v0 }
 0x96a   :  { %v621_v41 = vpop.f32.mrb[4].mxu1 }
 0x96b   :  { %v625_v42 = vadd.f32 %v621_v41, %v156_v40  ;;  %v2559_v43 = vpop.f32.mrb[5].mxu1 }
 0x96d   :  { %v2344_v44 = vmul.f32 -1.442695, %v625_v42 }
 0x96f   :  { %2861 = vpow2.f32 %v2344_v44  ;;  %v1152_v44 = vld [vmem:[%s3430_s4] sm:$0xff] }
 0x979   :  { %v2862_v45 = vpop.eup %2861 }
 0x97a   :  { %v629_v46 = vadd.f32 1.0, %v2862_v45  ;;  %v1153_v45 = vld [vmem:[%s3430_s4 + $0x8] sm:$0xff] }
 0x97c   :  { %2863 = vrcp.f32 %v629_v46  ;;  %v2775_v46 = vpack.c.bf16 %v1153_v45, %v1152_v44 }
 0x986   :  { %v2864_v47 = vpop.eup %2863 }
 0x987   :  { %v632_v48 = vmul.f32 2.0, %v2864_v47  ;;  %v639_v53 = vmul.f32 %v2864_v47, %v637_v52  ;;  %v1154_v52 = vld [vmem:[%s3430_s4 + $0x10] sm:$0xff] }
 0x989   :  { %v2345_v49 = vadd.f32 -1.0, %v632_v48 }
 0x98b   :  { %641 = vrot.lane.b32.xlu0 %v2345_v49, %s2942_s25 }
 0x9fd   :  { %v642_v50 = vpop.permute.xlu0 %641 }
 0x9fe   :  { %v644_v51 = vmul.f32 %v2864_v47, %v642_v50 }
 0xa00   :  { %646 = vrot.lane.b32.xlu0 %v644_v51, %s2943_s3 }
 0xa72   :  { %v647_v54 = vpop.permute.xlu0 %646 }
 0xa73   :  { %v649_v55 = vadd.f32 %v647_v54, %v639_v53  ;;  %v1155_v53 = vld [vmem:[%s3430_s4 + $0x18] sm:$0xff] }
 0xa74   :  { %v2779_v54 = vpack.c.bf16 %v1155_v53, %v1154_v52 }
 0xa75   :  { %2865 = vtanh.f32 %v649_v55 }
 0xa7f   :  { %v2866_v56 = vpop.eup %2865 }
 0xa80   :  { %652 = vrot.lane.b32.xlu1 %v2866_v56, %s2942_s25  ;;  %v1144_v56 = vld [vmem:[#allocation3] sm:$0xff] }
 0xa84   :  { %657 = vrot.lane.b32.xlu1 %v649_v55, %s2944_s26 }
 0xaf2   :  { %v653_v57 = vpop.permute.xlu1 %652 }
 0xaf3   :  { %v655_v58 = vmul.f32 %v2864_v47, %v653_v57  ;;  %v1145_v57 = vld [vmem:[#allocation3 + $0x8] sm:$0xff] }
 0xaf5   :  { %662 = vrot.lane.b32.xlu0 %v655_v58, %s2943_s3  ;;  %v1146_v58 = vld [vmem:[#allocation3 + $0x10] sm:$0xff] }
 0xaf6   :  { %v658_v59 = vpop.permute.xlu1 %657 }
 0xaf7   :  { %660 = vst.msk [vmem:[#allocation5] sm:$0xff] %vm187_vm2, %v658_v59 }
 0xafe   :  { %v753_v60 = vld [vmem:[#allocation5] sm:$0xff] }
 0xaff   :  { %755 = vrot.lane.b32.xlu1 %v753_v60, %s2943_s3 }
 0xb67   :  { %v663_v61 = vpop.permute.xlu0 %662 }
 0xb68   :  { %665 = vst.msk [vmem:[#allocation4] sm:$0xff] %vm187_vm2, %v663_v61  ;;  %667 = vst.msk [vmem:[#allocation3 + $0x18] sm:$0xff] %vm187_vm2, %v663_v61 }
 0xb6f   :  { %v670_v62 = vld [vmem:[#allocation4] sm:$0xff]  ;;  %v1147_v59 = vld [vmem:[#allocation3 + $0x18] sm:$0xff] }
 0xb70   :  { %2569 = vmatmul.mubr.msk.f32.vlgmr.msra.gmra.mrb[10].mxu0 %vm187_vm2, %v670_v62  ;;  %v171_v62 = vadd.f32 %v3051_v14, %v3120_v16 }
 0xb71   :  { %2765 = vmatpush3.bf16.msra.mxu0 %v3017_v8  ;;  %2590 = vmatprep.mubr.msk.f32.mxu0 %vm2940_vm1, %v2941_v4  ;;  %v756_v20 = vpop.permute.xlu1 %755 }
 0xb72   :  { %2766 = vmatprep.subr.bf16.mxu0 %v2939_v0 }
 0xb75   :  { %2768 = vmatpush3.bf16.msra.mxu0 %v3030_v12 }
 0xb76   :  { %2776 = vmatprep.subr.bf16.mxu0 %v2775_v46 }
 0xc43   :  { %v740_v1 = vpop.f32.mrb[10].mxu0 }
 0xc44   :  { %v744_v2 = vadd.f32 %v740_v1, %v161_v63  ;;  %v2570_v3 = vpop.f32.mrb[11].mxu0 }
 0xc46   :  { %v2347_v5 = vmul.f32 -1.442695, %v744_v2 }
 0xc48   :  { %2867 = vpow2.f32 %v2347_v5 }
 0xc52   :  { %v2868_v6 = vpop.eup %2867 }
 0xc53   :  { %v748_v7 = vadd.f32 1.0, %v2868_v6 }
 0xc55   :  { %2869 = vrcp.f32 %v748_v7 }
 0xc5f   :  { %v2870_v11 = vpop.eup %2869 }
 0xc60   :  { %v751_v13 = vmul.f32 2.0, %v2870_v11  ;;  %v758_v21 = vmul.f32 %v2870_v11, %v756_v20 }
 0xc62   :  { %v2348_v17 = vadd.f32 -1.0, %v751_v13 }
 0xc64   :  { %760 = vrot.lane.b32.xlu0 %v2348_v17, %s2942_s25 }
 0xcd6   :  { %v761_v18 = vpop.permute.xlu0 %760 }
 0xcd7   :  { %v763_v19 = vmul.f32 %v2870_v11, %v761_v18 }
 0xcd9   :  { %765 = vrot.lane.b32.xlu0 %v763_v19, %s2943_s3 }
 0xd4b   :  { %v766_v10 = vpop.permute.xlu0 %765 }
 0xd4c   :  { %v768_v22 = vadd.f32 %v766_v10, %v758_v21 }
 0xd4e   :  { %2871 = vtanh.f32 %v768_v22 }
 0xd58   :  { %v2872_v23 = vpop.eup %2871 }
 0xd59   :  { %771 = vrot.lane.b32.xlu1 %v2872_v23, %s2942_s25 }
 0xd5d   :  { %776 = vrot.lane.b32.xlu1 %v768_v22, %s2944_s26 }
 0xdcb   :  { %v772_v24 = vpop.permute.xlu1 %771 }
 0xdcc   :  { %v774_v25 = vmul.f32 %v2870_v11, %v772_v24 }
 0xdce   :  { %781 = vrot.lane.b32.xlu0 %v774_v25, %s2943_s3 }
 0xdcf   :  { %v777_v26 = vpop.permute.xlu1 %776 }
 0xdd0   :  { %779 = vst.msk [vmem:[#allocation5] sm:$0xff] %vm187_vm2, %v777_v26 }
 0xdd7   :  { %v872_v27 = vld [vmem:[#allocation5] sm:$0xff] }
 0xdd8   :  { %874 = vrot.lane.b32.xlu1 %v872_v27, %s2943_s3 }
 0xe40   :  { %v782_v28 = vpop.permute.xlu0 %781 }
 0xe41   :  { %784 = vst.msk [vmem:[#allocation4] sm:$0xff] %vm187_vm2, %v782_v28  ;;  %786 = vst.msk [vmem:[#allocation3 + $0x20] sm:$0xff] %vm187_vm2, %v782_v28 }
 0xe48   :  { %v789_v29 = vld [vmem:[#allocation4] sm:$0xff] }
 0xe49   :  { %2580 = vmatmul.mubr.msk.f32.vlgmr.msra.gmra.mrb[6].mxu1 %vm187_vm2, %v789_v29  ;;  %v1148_v60 = vld [vmem:[#allocation3 + $0x20] sm:$0xff] }
 0xe4a   :  { %2771 = vmatpush3.bf16.msra.mxu1 %v3017_v8  ;;  %2601 = vmatprep.mubr.msk.f32.mxu1 %vm2940_vm1, %v2941_v4  ;;  %v875_v40 = vpop.permute.xlu1 %874 }
 0xe4b   :  { %2772 = vmatprep.subr.bf16.mxu1 %v2939_v0 }
 0xe4e   :  { %2774 = vmatpush3.bf16.msra.mxu1 %v3030_v12 }
 0xe4f   :  { %2783 = vmatprep.subr.bf16.mxu1 %v2939_v0 }
 0xf1c   :  { %v859_v31 = vpop.f32.mrb[6].mxu1 }
 0xf1d   :  { %v863_v32 = vadd.f32 %v859_v31, %v166_v30  ;;  %v2581_v33 = vpop.f32.mrb[7].mxu1 }
 0xf1f   :  { %v2350_v34 = vmul.f32 -1.442695, %v863_v32 }
 0xf21   :  { %2873 = vpow2.f32 %v2350_v34 }
 0xf2b   :  { %v2874_v35 = vpop.eup %2873 }
 0xf2c   :  { %v867_v36 = vadd.f32 1.0, %v2874_v35  ;;  %v176_v35 = vadd.f32 %v3118_v15, %v3051_v14 }
 0xf2e   :  { %2875 = vrcp.f32 %v867_v36 }
 0xf38   :  { %v2876_v8 = vpop.eup %2875 }
 0xf39   :  { %v870_v37 = vmul.f32 2.0, %v2876_v8  ;;  %v877_v41 = vmul.f32 %v2876_v8, %v875_v40 }
 0xf3b   :  { %v2351_v38 = vadd.f32 -1.0, %v870_v37 }
 0xf3d   :  { %879 = vrot.lane.b32.xlu0 %v2351_v38, %s2942_s25 }
 0xfaf   :  { %v880_v39 = vpop.permute.xlu0 %879 }
 0xfb0   :  { %v882_v12 = vmul.f32 %v2876_v8, %v880_v39 }
 0xfb2   :  { %884 = vrot.lane.b32.xlu0 %v882_v12, %s2943_s3 }
0x1024   :  { %v885_v9 = vpop.permute.xlu0 %884 }
0x1025   :  { %v887_v42 = vadd.f32 %v885_v9, %v877_v41 }
0x1027   :  { %2877 = vtanh.f32 %v887_v42 }
0x1031   :  { %v2878_v43 = vpop.eup %2877 }
0x1032   :  { %890 = vrot.lane.b32.xlu1 %v2878_v43, %s2942_s25 }
0x1036   :  { %895 = vrot.lane.b32.xlu1 %v887_v42, %s2944_s26 }
0x10a4   :  { %v891_v47 = vpop.permute.xlu1 %890 }
0x10a5   :  { %v893_v48 = vmul.f32 %v2876_v8, %v891_v47  ;;  %v1302_v47 = vld [vmem:[%s3431_s5] sm:$0xff] }
0x10a7   :  { %900 = vrot.lane.b32.xlu0 %v893_v48, %s2943_s3  ;;  %v1303_v48 = vld [vmem:[%s3431_s5 + $0x8] sm:$0xff] }
0x10a8   :  { %v896_v49 = vpop.permute.xlu1 %895 }
0x10a9   :  { %898 = vst.msk [vmem:[#allocation5] sm:$0xff] %vm187_vm2, %v896_v49  ;;  %v3243_v49 = vpack.c.bf16 %v1303_v48, %v1302_v47 }
0x10b0   :  { %v991_v50 = vld [vmem:[#allocation5] sm:$0xff] }
0x10b1   :  { %993 = vrot.lane.b32.xlu1 %v991_v50, %s2943_s3  ;;  %v1304_v50 = vld [vmem:[%s3431_s5 + $0x10] sm:$0xff] }
0x1119   :  { %v901_v51 = vpop.permute.xlu0 %900 }
0x111a   :  { %903 = vst.msk [vmem:[#allocation4] sm:$0xff] %vm187_vm2, %v901_v51  ;;  %905 = vst.msk [vmem:[#allocation3 + $0x28] sm:$0xff] %vm187_vm2, %v901_v51  ;;  %v1305_v51 = vld [vmem:[%s3431_s5 + $0x18] sm:$0xff] }
0x111b   :  { %v3252_v52 = vpack.c.bf16 %v1305_v51, %v1304_v50 }
0x1121   :  { %v908_v55 = vld [vmem:[#allocation4] sm:$0xff]  ;;  %v1149_v61 = vld [vmem:[#allocation3 + $0x28] sm:$0xff] }
0x1122   :  { %2591 = vmatmul.mubr.msk.f32.vlgmr.msra.gmra.mrb[12].mxu0 %vm187_vm2, %v908_v55 }
0x1123   :  { %2778 = vmatpush3.bf16.msra.mxu0 %v2775_v46  ;;  %2612 = vmatprep.mubr.msk.f32.mxu0 %vm187_vm2, %v1144_v56  ;;  %v994_v23 = vpop.permute.xlu1 %993 }
0x1124   :  { %2780 = vmatprep.subr.bf16.mxu0 %v2779_v54 }
0x1127   :  { %2782 = vmatpush3.bf16.msra.mxu0 %v2779_v54 }
0x1128   :  { %2795 = vmatprep.subr.bf16.mxu0 %v2939_v0 }
0x112a   :  { %2613 = vmatmul.mubr.msk.f32.vlgmr.msra.gmra.mrb[14].mxu0 %vm187_vm2, %v1145_v57 }
0x112b   :  { %2615 = vmatprep.mubr.msk.f32.mxu0 %vm187_vm2, %v1146_v58  ;;  %2797 = vmatpush3.bf16.msra.mxu0 %v3243_v49 }
0x112c   :  { %2798 = vmatprep.subr.bf16.mxu0 %v2939_v0 }
0x112e   :  { %2616 = vmatmul.mubr.msk.f32.gmra.mrb[16].mxu0 %vm187_vm2, %v1147_v59 }
0x112f   :  { %2618 = vmatprep.mubr.msk.f32.mxu0 %vm187_vm2, %v1148_v60  ;;  %2800 = vmatpush3.bf16.msra.mxu0 %v3252_v52  ;;  %v3283_v60 = vld [vmem:[%s3432_s6] ss:$0 sm:$0xff] }
0x1130   :  { %2807 = vmatprep.subr.bf16.mxu0 %v2939_v0 }
0x1132   :  { %2619 = vmatmul.mubr.msk.f32.gmra.mrb[18].mxu0 %vm187_vm2, %v1149_v61 }
0x11f5   :  { %v978_v63 = vpop.f32.mrb[12].mxu0 }
0x11f6   :  { %v982_v1 = vadd.f32 %v978_v63, %v171_v62  ;;  %v2592_v2 = vpop.f32.mrb[13].mxu0 }
0x11f8   :  { %v2353_v3 = vmul.f32 -1.442695, %v982_v1 }
0x11fa   :  { %2879 = vpow2.f32 %v2353_v3 }
0x11fd   :  { %v3206_v5 = vpop.f32.mrb[14].mxu0 }
0x11fe   :  { %v3208_v6 = vpop.f32.mrb[15].mxu0 }
0x11ff   :  { %v1254_v61 = vadd.f32 %v3283_v60, %v3208_v6 }
0x1201   :  { %v3210_v7 = vpop.f32.mrb[16].mxu0 }
0x1202   :  { %v3212_v11 = vpop.f32.mrb[17].mxu0 }
0x1204   :  { %v2880_v13 = vpop.eup %2879 }
0x1205   :  { %v986_v17 = vadd.f32 1.0, %v2880_v13  ;;  %v3214_v18 = vpop.f32.mrb[18].mxu0 }
0x1206   :  { %v3216_v19 = vpop.f32.mrb[19].mxu0 }
0x1207   :  { %2881 = vrcp.f32 %v986_v17 }
0x1211   :  { %v2882_v16 = vpop.eup %2881 }
0x1212   :  { %v989_v20 = vmul.f32 2.0, %v2882_v16  ;;  %v996_v24 = vmul.f32 %v2882_v16, %v994_v23 }
0x1214   :  { %v2354_v21 = vadd.f32 -1.0, %v989_v20 }
0x1216   :  { %998 = vrot.lane.b32.xlu0 %v2354_v21, %s2942_s25 }
0x1288   :  { %v999_v10 = vpop.permute.xlu0 %998 }
0x1289   :  { %v1001_v22 = vmul.f32 %v2882_v16, %v999_v10 }
0x128b   :  { %1003 = vrot.lane.b32.xlu0 %v1001_v22, %s2943_s3 }
0x12fd   :  { %v1004_v25 = vpop.permute.xlu0 %1003 }
0x12fe   :  { %v1006_v26 = vadd.f32 %v1004_v25, %v996_v24 }
0x1300   :  { %2883 = vtanh.f32 %v1006_v26 }
0x130a   :  { %v2884_v27 = vpop.eup %2883 }
0x130b   :  { %1009 = vrot.lane.b32.xlu1 %v2884_v27, %s2942_s25 }
0x130f   :  { %1014 = vrot.lane.b32.xlu1 %v1006_v26, %s2944_s26 }
0x137d   :  { %v1010_v28 = vpop.permute.xlu1 %1009 }
0x137e   :  { %v1012_v29 = vmul.f32 %v2882_v16, %v1010_v28 }
0x1380   :  { %1019 = vrot.lane.b32.xlu0 %v1012_v29, %s2943_s3 }
0x1381   :  { %v1015_v30 = vpop.permute.xlu1 %1014 }
0x1382   :  { %1017 = vst.msk [vmem:[#allocation5] sm:$0xff] %vm187_vm2, %v1015_v30 }
0x1389   :  { %v1110_v31 = vld [vmem:[#allocation5] sm:$0xff] }
0x138a   :  { %1112 = vrot.lane.b32.xlu1 %v1110_v31, %s2943_s3 }
0x13f2   :  { %v1020_v32 = vpop.permute.xlu0 %1019 }
0x13f3   :  { %1022 = vst.msk [vmem:[#allocation4] sm:$0xff] %vm187_vm2, %v1020_v32  ;;  %1024 = vst.msk [vmem:[#allocation3 + $0x30] sm:$0xff] %vm187_vm2, %v1020_v32 }
0x13fa   :  { %v1027_v33 = vld [vmem:[#allocation4] sm:$0xff]  ;;  %v1150_v34 = vld [vmem:[#allocation3 + $0x30] sm:$0xff] }
0x13fb   :  { %2602 = vmatmul.mubr.msk.f32.vlgmr.msra.gmra.mrb[8].mxu1 %vm187_vm2, %v1027_v33  ;;  %2621 = vmatprep.mubr.msk.f32.mxu0 %vm187_vm2, %v1150_v34  ;;  %v1259_v34 = vadd.f32 %v3206_v5, %v3283_v60 }
0x13fc   :  { %2632 = vmatprep.mubr.msk.f32.mxu1 %vm2940_vm1, %v2941_v4  ;;  %v1113_v44 = vpop.permute.xlu1 %1112  ;;  %2785 = vmatpush3.bf16.msra.mxu1 %v3243_v49 }
0x13fd   :  { %2786 = vmatprep.subr.bf16.mxu1 %v2939_v0 }
0x1400   :  { %2788 = vmatpush3.bf16.msra.mxu1 %v3252_v52 }
0x1401   :  { %2789 = vmatprep.subr.bf16.mxu1 %v2939_v0 }
0x14ce   :  { %v1097_v36 = vpop.f32.mrb[8].mxu1 }
0x14cf   :  { %v1101_v8 = vadd.f32 %v1097_v36, %v176_v35  ;;  %v2603_v37 = vpop.f32.mrb[9].mxu1 }
0x14d1   :  { %v2356_v38 = vmul.f32 -1.442695, %v1101_v8 }
0x14d3   :  { %2885 = vpow2.f32 %v2356_v38 }
0x14dd   :  { %v2886_v39 = vpop.eup %2885 }
0x14de   :  { %v1105_v12 = vadd.f32 1.0, %v2886_v39 }
0x14e0   :  { %2887 = vrcp.f32 %v1105_v12 }
0x14ea   :  { %v2888_v40 = vpop.eup %2887 }
0x14eb   :  { %v1108_v41 = vmul.f32 2.0, %v2888_v40  ;;  %v1115_v45 = vmul.f32 %v2888_v40, %v1113_v44 }
0x14ed   :  { %v2357_v9 = vadd.f32 -1.0, %v1108_v41 }
0x14ef   :  { %1117 = vrot.lane.b32.xlu0 %v2357_v9, %s2942_s25 }
0x1561   :  { %v1118_v42 = vpop.permute.xlu0 %1117 }
0x1562   :  { %v1120_v43 = vmul.f32 %v2888_v40, %v1118_v42 }
0x1564   :  { %1122 = vrot.lane.b32.xlu0 %v1120_v43, %s2943_s3 }
0x15d6   :  { %v1123_v14 = vpop.permute.xlu0 %1122 }
0x15d7   :  { %v1125_v15 = vadd.f32 %v1123_v14, %v1115_v45 }
0x15d9   :  { %2889 = vtanh.f32 %v1125_v15 }
0x15e3   :  { %v2890_v46 = vpop.eup %2889 }
0x15e4   :  { %1128 = vrot.lane.b32.xlu1 %v2890_v46, %s2942_s25 }
0x15e8   :  { %1133 = vrot.lane.b32.xlu1 %v1125_v15, %s2944_s26 }
0x1656   :  { %v1129_v53 = vpop.permute.xlu1 %1128 }
0x1657   :  { %v1131_v54 = vmul.f32 %v2888_v40, %v1129_v53  ;;  %v1264_v53 = vadd.f32 %v3283_v60, %v3212_v11 }
0x1659   :  { %1138 = vrot.lane.b32.xlu0 %v1131_v54, %s2943_s3 }
0x165a   :  { %v1134_v55 = vpop.permute.xlu1 %1133 }
0x165b   :  { %1136 = vst.msk [vmem:[#allocation5] sm:$0xff] %vm187_vm2, %v1134_v55 }
0x165c   :  { %1301 = vst.msk [vmem:[#allocation5] sm:$0xff] %vm187_vm2, %v2941_v4 }
0x1663   :  { %v1390_v56 = vld [vmem:[#allocation5] sm:$0xff] }
0x1664   :  { %1392 = vrot.lane.b32.xlu1 %v1390_v56, %s2943_s3 }
0x16cb   :  { %v1139_v57 = vpop.permute.xlu0 %1138 }
0x16cc   :  { %1141 = vst.msk [vmem:[#allocation4] sm:$0xff] %vm187_vm2, %v1139_v57  ;;  %1143 = vst.msk [vmem:[#allocation3 + $0x38] sm:$0xff] %vm187_vm2, %v1139_v57 }
0x16cd   :  { %1300 = vst.msk [vmem:[#allocation4] sm:$0xff] %vm187_vm2, %v2941_v4 }
0x16d3   :  { %v1151_v58 = vld [vmem:[#allocation3 + $0x38] sm:$0xff] }
0x16d4   :  { %2622 = vmatmul.mubr.msk.f32.gmra.mrb[20].mxu0 %vm187_vm2, %v1151_v58  ;;  %v1307_v59 = vld [vmem:[#allocation4] sm:$0xff] }
0x16d5   :  { %2633 = vmatmul.mubr.msk.f32.vlgmr.msra.gmra.mrb[10].mxu1 %vm187_vm2, %v1307_v59  ;;  %2654 = vmatprep.mubr.msk.f32.mxu0 %vm2940_vm1, %v2941_v4 }
0x16d6   :  { %2791 = vmatpush3.bf16.msra.mxu1 %v3243_v49  ;;  %2643 = vmatprep.mubr.msk.f32.mxu1 %vm2940_vm1, %v2941_v4  ;;  %v1393_v6 = vpop.permute.xlu1 %1392 }
0x16d7   :  { %2792 = vmatprep.subr.bf16.mxu1 %v2939_v0 }
0x16da   :  { %2794 = vmatpush3.bf16.msra.mxu1 %v3252_v52 }
0x16db   :  { %2801 = vmatprep.subr.bf16.mxu1 %v2939_v0 }
0x17a7   :  { %v3287_v62 = vpop.f32.mrb[20].mxu0 }
0x17a8   :  { %v3289_v63 = vpop.f32.mrb[21].mxu0  ;;  %v1377_v1 = vpop.f32.mrb[10].mxu1 }
0x17a9   :  { %v1381_v2 = vadd.f32 %v1377_v1, %v1254_v61  ;;  %v2634_v3 = vpop.f32.mrb[11].mxu1 }
0x17ab   :  { %v2368_v13 = vmul.f32 -1.442695, %v1381_v2 }
0x17ad   :  { %2891 = vpow2.f32 %v2368_v13 }
0x17b7   :  { %v2892_v17 = vpop.eup %2891 }
0x17b8   :  { %v1385_v16 = vadd.f32 1.0, %v2892_v17 }
0x17ba   :  { %2893 = vrcp.f32 %v1385_v16 }
0x17c4   :  { %v2894_v20 = vpop.eup %2893 }
0x17c5   :  { %v1388_v21 = vmul.f32 2.0, %v2894_v20  ;;  %v1395_v24 = vmul.f32 %v2894_v20, %v1393_v6 }
0x17c7   :  { %v2369_v10 = vadd.f32 -1.0, %v1388_v21 }
0x17c9   :  { %1397 = vrot.lane.b32.xlu0 %v2369_v10, %s2942_s25 }
0x183b   :  { %v1398_v22 = vpop.permute.xlu0 %1397 }
0x183c   :  { %v1400_v23 = vmul.f32 %v2894_v20, %v1398_v22 }
0x183e   :  { %1402 = vrot.lane.b32.xlu0 %v1400_v23, %s2943_s3 }
0x18b0   :  { %v1403_v25 = vpop.permute.xlu0 %1402 }
0x18b1   :  { %v1405_v26 = vadd.f32 %v1403_v25, %v1395_v24 }
0x18b3   :  { %2895 = vtanh.f32 %v1405_v26 }
0x18bd   :  { %v2896_v27 = vpop.eup %2895 }
0x18be   :  { %1408 = vrot.lane.b32.xlu1 %v2896_v27, %s2942_s25 }
0x18c2   :  { %1413 = vrot.lane.b32.xlu1 %v1405_v26, %s2944_s26  ;;  %v1269_v26 = vadd.f32 %v3210_v7, %v3283_v60 }
0x1930   :  { %v1409_v28 = vpop.permute.xlu1 %1408 }
0x1931   :  { %v1411_v29 = vmul.f32 %v2894_v20, %v1409_v28 }
0x1933   :  { %1418 = vrot.lane.b32.xlu0 %v1411_v29, %s2943_s3 }
0x1934   :  { %v1414_v30 = vpop.permute.xlu1 %1413 }
0x1935   :  { %1416 = vst.msk [vmem:[#allocation5] sm:$0xff] %vm187_vm2, %v1414_v30 }
0x193c   :  { %v1506_v31 = vld [vmem:[#allocation5] sm:$0xff] }
0x193d   :  { %1508 = vrot.lane.b32.xlu1 %v1506_v31, %s2943_s3 }
0x19a5   :  { %v1419_v32 = vpop.permute.xlu0 %1418 }
0x19a6   :  { %1421 = vst.msk [vmem:[#allocation4] sm:$0xff] %vm187_vm2, %v1419_v32 }
0x19ad   :  { %v1423_v33 = vld [vmem:[#allocation4] sm:$0xff] }
0x19ae   :  { %2644 = vmatmul.mubr.msk.f32.vlgmr.msra.gmra.mrb[12].mxu1 %vm187_vm2, %v1423_v33 }
0x19af   :  { %2803 = vmatpush3.bf16.msra.mxu1 %v3243_v49  ;;  %2665 = vmatprep.mubr.msk.f32.mxu1 %vm2940_vm1, %v2941_v4  ;;  %v1509_v43 = vpop.permute.xlu1 %1508 }
0x19b0   :  { %2804 = vmatprep.subr.bf16.mxu1 %v2939_v0 }
0x19b3   :  { %2806 = vmatpush3.bf16.msra.mxu1 %v3252_v52 }
0x19b4   :  { %2813 = vmatprep.subr.bf16.mxu1 %v2939_v0 }
0x1a81   :  { %v1493_v35 = vpop.f32.mrb[12].mxu1 }
0x1a82   :  { %v1497_v36 = vadd.f32 %v1493_v35, %v1259_v34  ;;  %v2645_v8 = vpop.f32.mrb[13].mxu1 }
0x1a84   :  { %v2371_v37 = vmul.f32 -1.442695, %v1497_v36 }
0x1a86   :  { %2897 = vpow2.f32 %v2371_v37 }
0x1a90   :  { %v2898_v38 = vpop.eup %2897 }
0x1a91   :  { %v1501_v39 = vadd.f32 1.0, %v2898_v38 }
0x1a93   :  { %2899 = vrcp.f32 %v1501_v39 }
0x1a9d   :  { %v2900_v12 = vpop.eup %2899 }
0x1a9e   :  { %v1504_v40 = vmul.f32 2.0, %v2900_v12  ;;  %v1511_v44 = vmul.f32 %v2900_v12, %v1509_v43 }
0x1aa0   :  { %v2372_v41 = vadd.f32 -1.0, %v1504_v40 }
0x1aa2   :  { %1513 = vrot.lane.b32.xlu0 %v2372_v41, %s2942_s25 }
0x1b14   :  { %v1514_v9 = vpop.permute.xlu0 %1513 }
0x1b15   :  { %v1516_v42 = vmul.f32 %v2900_v12, %v1514_v9 }
0x1b17   :  { %1518 = vrot.lane.b32.xlu0 %v1516_v42, %s2943_s3 }
0x1b89   :  { %v1519_v5 = vpop.permute.xlu0 %1518 }
0x1b8a   :  { %v1521_v45 = vadd.f32 %v1519_v5, %v1511_v44  ;;  %v1274_v5 = vadd.f32 %v3283_v60, %v3216_v19 }
0x1b8c   :  { %2901 = vtanh.f32 %v1521_v45 }
0x1b96   :  { %v2902_v14 = vpop.eup %2901 }
0x1b97   :  { %1524 = vrot.lane.b32.xlu1 %v2902_v14, %s2942_s25 }
0x1b9b   :  { %1529 = vrot.lane.b32.xlu1 %v1521_v45, %s2944_s26 }
0x1c09   :  { %v1525_v15 = vpop.permute.xlu1 %1524 }
0x1c0a   :  { %v1527_v46 = vmul.f32 %v2900_v12, %v1525_v15 }
0x1c0c   :  { %1534 = vrot.lane.b32.xlu0 %v1527_v46, %s2943_s3 }
0x1c0d   :  { %v1530_v47 = vpop.permute.xlu1 %1529 }
0x1c0e   :  { %1532 = vst.msk [vmem:[#allocation5] sm:$0xff] %vm187_vm2, %v1530_v47 }
0x1c15   :  { %v1622_v48 = vld [vmem:[#allocation5] sm:$0xff] }
0x1c16   :  { %1624 = vrot.lane.b32.xlu1 %v1622_v48, %s2943_s3 }
0x1c7e   :  { %v1535_v50 = vpop.permute.xlu0 %1534 }
0x1c7f   :  { %1537 = vst.msk [vmem:[#allocation4] sm:$0xff] %vm187_vm2, %v1535_v50 }
0x1c86   :  { %v1539_v51 = vld [vmem:[#allocation4] sm:$0xff] }
0x1c87   :  { %2655 = vmatmul.mubr.msk.f32.vlgmr.msra.gmra.mrb[22].mxu0 %vm187_vm2, %v1539_v51 }
0x1c88   :  { %2809 = vmatpush3.bf16.msra.mxu0 %v3243_v49  ;;  %2676 = vmatprep.mubr.msk.f32.mxu0 %vm2940_vm1, %v2941_v4  ;;  %v1625_v17 = vpop.permute.xlu1 %1624 }
0x1c89   :  { %2810 = vmatprep.subr.bf16.mxu0 %v2939_v0 }
0x1c8c   :  { %2812 = vmatpush3.bf16.msra.mxu0 %v3252_v52 }
0x1c8d   :  { %2819 = vmatprep.subr.bf16.mxu0 %v2939_v0 }
0x1d5a   :  { %v1609_v54 = vpop.f32.mrb[22].mxu0 }
0x1d5b   :  { %v1613_v55 = vadd.f32 %v1609_v54, %v1264_v53  ;;  %v2656_v56 = vpop.f32.mrb[23].mxu0 }
0x1d5d   :  { %v2374_v57 = vmul.f32 -1.442695, %v1613_v55 }
0x1d5f   :  { %2903 = vpow2.f32 %v2374_v57 }
0x1d69   :  { %v2904_v58 = vpop.eup %2903 }
0x1d6a   :  { %v1617_v59 = vadd.f32 1.0, %v2904_v58 }
0x1d6c   :  { %2905 = vrcp.f32 %v1617_v59 }
0x1d76   :  { %v2906_v61 = vpop.eup %2905 }
0x1d77   :  { %v1620_v1 = vmul.f32 2.0, %v2906_v61  ;;  %v1627_v16 = vmul.f32 %v2906_v61, %v1625_v17 }
0x1d79   :  { %v2375_v2 = vadd.f32 -1.0, %v1620_v1 }
0x1d7b   :  { %1629 = vrot.lane.b32.xlu0 %v2375_v2, %s2942_s25 }
0x1ded   :  { %v1630_v3 = vpop.permute.xlu0 %1629 }
0x1dee   :  { %v1632_v13 = vmul.f32 %v2906_v61, %v1630_v3 }
0x1df0   :  { %1634 = vrot.lane.b32.xlu0 %v1632_v13, %s2943_s3 }
0x1e62   :  { %v1635_v11 = vpop.permute.xlu0 %1634 }
0x1e63   :  { %v1637_v20 = vadd.f32 %v1635_v11, %v1627_v16  ;;  %v1279_v16 = vadd.f32 %v3214_v18, %v3283_v60 }
0x1e65   :  { %2907 = vtanh.f32 %v1637_v20 }
0x1e6f   :  { %v2908_v21 = vpop.eup %2907 }
0x1e70   :  { %1640 = vrot.lane.b32.xlu1 %v2908_v21, %s2942_s25 }
0x1e74   :  { %1645 = vrot.lane.b32.xlu1 %v1637_v20, %s2944_s26 }
0x1ee2   :  { %v1641_v10 = vpop.permute.xlu1 %1640 }
0x1ee3   :  { %v1643_v22 = vmul.f32 %v2906_v61, %v1641_v10 }
0x1ee5   :  { %1650 = vrot.lane.b32.xlu0 %v1643_v22, %s2943_s3 }
0x1ee6   :  { %v1646_v23 = vpop.permute.xlu1 %1645 }
0x1ee7   :  { %1648 = vst.msk [vmem:[#allocation5] sm:$0xff] %vm187_vm2, %v1646_v23 }
0x1eee   :  { %v1738_v6 = vld [vmem:[#allocation5] sm:$0xff] }
0x1eef   :  { %1740 = vrot.lane.b32.xlu1 %v1738_v6, %s2943_s3 }
0x1f57   :  { %v1651_v24 = vpop.permute.xlu0 %1650 }
0x1f58   :  { %1653 = vst.msk [vmem:[#allocation4] sm:$0xff] %vm187_vm2, %v1651_v24 }
0x1f5f   :  { %v1655_v25 = vld [vmem:[#allocation4] sm:$0xff] }
0x1f60   :  { %2666 = vmatmul.mubr.msk.f32.vlgmr.msra.gmra.mrb[14].mxu1 %vm187_vm2, %v1655_v25 }
0x1f61   :  { %2815 = vmatpush3.bf16.msra.mxu1 %v3243_v49  ;;  %2687 = vmatprep.mubr.msk.f32.mxu1 %vm2940_vm1, %v2941_v4  ;;  %v1741_v37 = vpop.permute.xlu1 %1740 }
0x1f62   :  { %2816 = vmatprep.subr.bf16.mxu1 %v2939_v0 }
0x1f65   :  { %2818 = vmatpush3.bf16.msra.mxu1 %v3252_v52 }
0x1f66   :  { %2825 = vmatprep.subr.bf16.mxu1 %v2939_v0 }
0x2033   :  { %v1725_v27 = vpop.f32.mrb[14].mxu1 }
0x2034   :  { %v1729_v28 = vadd.f32 %v1725_v27, %v1269_v26  ;;  %v2667_v29 = vpop.f32.mrb[15].mxu1 }
0x2036   :  { %v2377_v30 = vmul.f32 -1.442695, %v1729_v28 }
0x2038   :  { %2909 = vpow2.f32 %v2377_v30 }
0x2042   :  { %v2910_v31 = vpop.eup %2909 }
0x2043   :  { %v1733_v32 = vadd.f32 1.0, %v2910_v31 }
0x2045   :  { %2911 = vrcp.f32 %v1733_v32 }
0x204f   :  { %v2912_v33 = vpop.eup %2911 }
0x2050   :  { %v1736_v34 = vmul.f32 2.0, %v2912_v33  ;;  %v1743_v38 = vmul.f32 %v2912_v33, %v1741_v37 }
0x2052   :  { %v2378_v35 = vadd.f32 -1.0, %v1736_v34 }
0x2054   :  { %1745 = vrot.lane.b32.xlu0 %v2378_v35, %s2942_s25 }
0x20c6   :  { %v1746_v36 = vpop.permute.xlu0 %1745 }
0x20c7   :  { %v1748_v8 = vmul.f32 %v2912_v33, %v1746_v36  ;;  %v1284_v36 = vadd.f32 %v3283_v60, %v3289_v63 }
0x20c9   :  { %1750 = vrot.lane.b32.xlu0 %v1748_v8, %s2943_s3 }
0x213b   :  { %v1751_v7 = vpop.permute.xlu0 %1750 }
0x213c   :  { %v1753_v39 = vadd.f32 %v1751_v7, %v1743_v38 }
0x213e   :  { %2913 = vtanh.f32 %v1753_v39 }
0x2148   :  { %v2914_v12 = vpop.eup %2913 }
0x2149   :  { %1756 = vrot.lane.b32.xlu1 %v2914_v12, %s2942_s25 }
0x214d   :  { %1761 = vrot.lane.b32.xlu1 %v1753_v39, %s2944_s26 }
0x21bb   :  { %v1757_v40 = vpop.permute.xlu1 %1756 }
0x21bc   :  { %v1759_v41 = vmul.f32 %v2912_v33, %v1757_v40 }
0x21be   :  { %1766 = vrot.lane.b32.xlu0 %v1759_v41, %s2943_s3 }
0x21bf   :  { %v1762_v9 = vpop.permute.xlu1 %1761 }
0x21c0   :  { %1764 = vst.msk [vmem:[#allocation5] sm:$0xff] %vm187_vm2, %v1762_v9 }
0x21c7   :  { %v1854_v42 = vld [vmem:[#allocation5] sm:$0xff] }
0x21c8   :  { %1856 = vrot.lane.b32.xlu1 %v1854_v42, %s2943_s3 }
0x2230   :  { %v1767_v43 = vpop.permute.xlu0 %1766 }
0x2231   :  { %1769 = vst.msk [vmem:[#allocation4] sm:$0xff] %vm187_vm2, %v1767_v43 }
0x2238   :  { %v1771_v44 = vld [vmem:[#allocation4] sm:$0xff] }
0x2239   :  { %2677 = vmatmul.mubr.msk.f32.vlgmr.msra.gmra.mrb[24].mxu0 %vm187_vm2, %v1771_v44 }
0x223a   :  { %2821 = vmatpush3.bf16.msra.mxu0 %v3243_v49  ;;  %2698 = vmatprep.mubr.msk.f32.mxu0 %vm2940_vm1, %v2941_v4  ;;  %v1857_v56 = vpop.permute.xlu1 %1856 }
0x223b   :  { %2822 = vmatprep.subr.bf16.mxu0 %v2939_v0 }
0x223e   :  { %2824 = vmatpush3.bf16.msra.mxu0 %v3252_v52 }
0x223f   :  { %2831 = vmatprep.subr.bf16.mxu0 %v2939_v0 }
0x230c   :  { %v1841_v45 = vpop.f32.mrb[24].mxu0 }
0x230d   :  { %v1845_v14 = vadd.f32 %v1841_v45, %v1274_v5  ;;  %v2678_v15 = vpop.f32.mrb[25].mxu0 }
0x230f   :  { %v2380_v46 = vmul.f32 -1.442695, %v1845_v14 }
0x2311   :  { %2915 = vpow2.f32 %v2380_v46 }
0x231b   :  { %v2916_v47 = vpop.eup %2915 }
0x231c   :  { %v1849_v48 = vadd.f32 1.0, %v2916_v47 }
0x231e   :  { %2917 = vrcp.f32 %v1849_v48 }
0x2328   :  { %v2918_v50 = vpop.eup %2917 }
0x2329   :  { %v1852_v51 = vmul.f32 2.0, %v2918_v50  ;;  %v1859_v57 = vmul.f32 %v2918_v50, %v1857_v56 }
0x232b   :  { %v2381_v53 = vadd.f32 -1.0, %v1852_v51  ;;  %v1289_v51 = vadd.f32 %v3287_v62, %v3283_v60 }
0x232d   :  { %1861 = vrot.lane.b32.xlu0 %v2381_v53, %s2942_s25 }
0x239f   :  { %v1862_v54 = vpop.permute.xlu0 %1861 }
0x23a0   :  { %v1864_v55 = vmul.f32 %v2918_v50, %v1862_v54 }
0x23a2   :  { %1866 = vrot.lane.b32.xlu0 %v1864_v55, %s2943_s3 }
0x2414   :  { %v1867_v19 = vpop.permute.xlu0 %1866 }
0x2415   :  { %v1869_v58 = vadd.f32 %v1867_v19, %v1859_v57 }
0x2417   :  { %2919 = vtanh.f32 %v1869_v58 }
0x2421   :  { %v2920_v59 = vpop.eup %2919 }
0x2422   :  { %1872 = vrot.lane.b32.xlu1 %v2920_v59, %s2942_s25 }
0x2426   :  { %1877 = vrot.lane.b32.xlu1 %v1869_v58, %s2944_s26 }
0x2494   :  { %v1873_v61 = vpop.permute.xlu1 %1872 }
0x2495   :  { %v1875_v1 = vmul.f32 %v2918_v50, %v1873_v61 }
0x2497   :  { %1882 = vrot.lane.b32.xlu0 %v1875_v1, %s2943_s3 }
0x2498   :  { %v1878_v2 = vpop.permute.xlu1 %1877 }
0x2499   :  { %1880 = vst.msk [vmem:[#allocation5] sm:$0xff] %vm187_vm2, %v1878_v2 }
0x24a0   :  { %v1970_v3 = vld [vmem:[#allocation5] sm:$0xff] }
0x24a1   :  { %1972 = vrot.lane.b32.xlu1 %v1970_v3, %s2943_s3 }
0x2509   :  { %v1883_v13 = vpop.permute.xlu0 %1882 }
0x250a   :  { %1885 = vst.msk [vmem:[#allocation4] sm:$0xff] %vm187_vm2, %v1883_v13 }
0x2511   :  { %v1887_v17 = vld [vmem:[#allocation4] sm:$0xff] }
0x2512   :  { %2688 = vmatmul.mubr.msk.f32.vlgmr.msra.gmra.mrb[16].mxu1 %vm187_vm2, %v1887_v17 }
0x2513   :  { %2827 = vmatpush3.bf16.msra.mxu1 %v3243_v49  ;;  %2709 = vmatprep.mubr.msk.f32.mxu1 %vm2940_vm1, %v2941_v4 }
0x2514   :  { %2828 = vmatprep.subr.bf16.mxu1 %v2939_v0 }
0x2517   :  { %2830 = vmatpush3.bf16.msra.mxu1 %v3252_v52  ;;  %v1973_v52 = vpop.permute.xlu1 %1972 }
0x25e5   :  { %v1957_v11 = vpop.f32.mrb[16].mxu1 }
0x25e6   :  { %v1961_v20 = vadd.f32 %v1957_v11, %v1279_v16  ;;  %v2689_v21 = vpop.f32.mrb[17].mxu1  ;;  %v2235_v16 = vld [vmem:[%s3433_s7] sm:$0xff]  ;;  %v2236_v11 = vld [vmem:[%s3433_s7 + $0x8] sm:$0xff] }
0x25e7   :  { %v2237_v21 = vld [vmem:[%s3433_s7 + $0x10] sm:$0xff] }
0x25e8   :  { %v2383_v10 = vmul.f32 -1.442695, %v1961_v20  ;;  %v2832_v20 = vpack.c.bf16 %v2236_v11, %v2235_v16 }
0x25ea   :  { %2921 = vpow2.f32 %v2383_v10  ;;  %v2238_v10 = vld [vmem:[%s3433_s7 + $0x18] sm:$0xff] }
0x25f4   :  { %v2922_v22 = vpop.eup %2921 }
0x25f5   :  { %v1965_v23 = vadd.f32 1.0, %v2922_v22  ;;  %v2835_v22 = vpack.c.bf16 %v2238_v10, %v2237_v21 }
0x25f7   :  { %2923 = vrcp.f32 %v1965_v23 }
0x2601   :  { %v2924_v6 = vpop.eup %2923 }
0x2602   :  { %v1968_v49 = vmul.f32 2.0, %v2924_v6  ;;  %v1975_v27 = vmul.f32 %v2924_v6, %v1973_v52 }
0x2604   :  { %v2384_v24 = vadd.f32 -1.0, %v1968_v49 }
0x2606   :  { %1977 = vrot.lane.b32.xlu0 %v2384_v24, %s2942_s25 }
0x2678   :  { %v1978_v25 = vpop.permute.xlu0 %1977 }
0x2679   :  { %v1980_v26 = vmul.f32 %v2924_v6, %v1978_v25 }
0x267b   :  { %1982 = vrot.lane.b32.xlu0 %v1980_v26, %s2943_s3  ;;  %v2391_v26 = vld [vmem:[%s3434_s8] ss:$0 sm:$0xff] }
0x26ed   :  { %v1983_v18 = vpop.permute.xlu0 %1982 }
0x26ee   :  { %v1985_v28 = vadd.f32 %v1983_v18, %v1975_v27 }
0x26f0   :  { %2925 = vtanh.f32 %v1985_v28 }
0x26fa   :  { %v2926_v29 = vpop.eup %2925 }
0x26fb   :  { %1988 = vrot.lane.b32.xlu1 %v2926_v29, %s2942_s25 }
0x26ff   :  { %1993 = vrot.lane.b32.xlu1 %v1985_v28, %s2944_s26 }
0x276d   :  { %v1989_v30 = vpop.permute.xlu1 %1988 }
0x276e   :  { %v1991_v31 = vmul.f32 %v2924_v6, %v1989_v30 }
0x2770   :  { %1998 = vrot.lane.b32.xlu0 %v1991_v31, %s2943_s3 }
0x2771   :  { %v1994_v32 = vpop.permute.xlu1 %1993 }
0x2772   :  { %1996 = vst.msk [vmem:[#allocation5] sm:$0xff] %vm187_vm2, %v1994_v32 }
0x2779   :  { %v2086_v33 = vld [vmem:[#allocation5] sm:$0xff] }
0x277a   :  { %2088 = vrot.lane.b32.xlu1 %v2086_v33, %s2943_s3 }
0x27e2   :  { %v1999_v34 = vpop.permute.xlu0 %1998 }
0x27e3   :  { %2001 = vst.msk [vmem:[#allocation4] sm:$0xff] %vm187_vm2, %v1999_v34 }
0x27ea   :  { %v2003_v35 = vld [vmem:[#allocation4] sm:$0xff] }
0x27eb   :  { %2699 = vmatmul.mubr.msk.f32.vlgmr.msra.gmra.mrb[26].mxu0 %vm187_vm2, %v2003_v35 }
0x27ec   :  { %2720 = vmatprep.mubr.msk.f32.mxu0 %vm2940_vm1, %v2941_v4  ;;  %v2089_v4 = vpop.permute.xlu1 %2088  ;;  %2833 = vmatpush3.bf16.msra.mxu0 %v2832_v20 }
0x27ed   :  { %2834 = vmatprep.subr.bf16.mxu0 %v2939_v0 }
0x27f0   :  { %2836 = vmatpush3.bf16.msra.mxu0 %v2835_v22 }
0x28be   :  { %v2073_v8 = vpop.f32.mrb[26].mxu0 }
0x28bf   :  { %v2077_v37 = vadd.f32 %v2073_v8, %v1284_v36  ;;  %v2700_v38 = vpop.f32.mrb[27].mxu0 }
0x28c1   :  { %v2386_v7 = vmul.f32 -1.442695, %v2077_v37 }
0x28c3   :  { %2927 = vpow2.f32 %v2386_v7 }
0x28cd   :  { %v2928_v39 = vpop.eup %2927 }
0x28ce   :  { %v2081_v12 = vadd.f32 1.0, %v2928_v39 }
0x28d0   :  { %2929 = vrcp.f32 %v2081_v12 }
0x28da   :  { %v2930_v40 = vpop.eup %2929 }
0x28db   :  { %v2084_v41 = vmul.f32 2.0, %v2930_v40  ;;  %v2091_v44 = vmul.f32 %v2930_v40, %v2089_v4 }
0x28dd   :  { %v2387_v9 = vadd.f32 -1.0, %v2084_v41 }
0x28df   :  { %2093 = vrot.lane.b32.xlu0 %v2387_v9, %s2942_s25 }
0x2951   :  { %v2094_v42 = vpop.permute.xlu0 %2093 }
0x2952   :  { %v2096_v43 = vmul.f32 %v2930_v40, %v2094_v42 }
0x2954   :  { %2098 = vrot.lane.b32.xlu0 %v2096_v43, %s2943_s3 }
0x29c6   :  { %v2099_v63 = vpop.permute.xlu0 %2098 }
0x29c7   :  { %v2101_v5 = vadd.f32 %v2099_v63, %v2091_v44 }
0x29c9   :  { %2931 = vtanh.f32 %v2101_v5 }
0x29d3   :  { %v2932_v45 = vpop.eup %2931 }
0x29d4   :  { %2104 = vrot.lane.b32.xlu1 %v2932_v45, %s2942_s25 }
0x29d8   :  { %2109 = vrot.lane.b32.xlu1 %v2101_v5, %s2944_s26 }
0x2a46   :  { %v2105_v14 = vpop.permute.xlu1 %2104 }
0x2a47   :  { %v2107_v15 = vmul.f32 %v2930_v40, %v2105_v14 }
0x2a49   :  { %2114 = vrot.lane.b32.xlu0 %v2107_v15, %s2943_s3 }
0x2a4a   :  { %v2110_v46 = vpop.permute.xlu1 %2109 }
0x2a4b   :  { %2112 = vst.msk [vmem:[#allocation5] sm:$0xff] %vm187_vm2, %v2110_v46 }
0x2a52   :  { %v2202_v47 = vld [vmem:[#allocation5] sm:$0xff] }
0x2a53   :  { %2204 = vrot.lane.b32.xlu1 %v2202_v47, %s2943_s3 }
0x2abb   :  { %v2115_v48 = vpop.permute.xlu0 %2114 }
0x2abc   :  { %2117 = vst.msk [vmem:[#allocation4] sm:$0xff] %vm187_vm2, %v2115_v48 }
0x2ac3   :  { %v2119_v50 = vld [vmem:[#allocation4] sm:$0xff] }
0x2ac4   :  { %2710 = vmatmul.mubr.msk.f32.vlgmr.msra.gmra.mrb[18].mxu1 %vm187_vm2, %v2119_v50 }
0x2ac5   :  { %v2205_v3 = vpop.permute.xlu1 %2204 }
0x2b97   :  { %v2189_v53 = vpop.f32.mrb[18].mxu1 }
0x2b98   :  { %v2193_v54 = vadd.f32 %v2189_v53, %v1289_v51  ;;  %v2711_v55 = vpop.f32.mrb[19].mxu1 }
0x2b9a   :  { %v2389_v56 = vmul.f32 -1.442695, %v2193_v54 }
0x2b9c   :  { %2933 = vpow2.f32 %v2389_v56 }
0x2ba6   :  { %v2934_v57 = vpop.eup %2933 }
0x2ba7   :  { %v2197_v19 = vadd.f32 1.0, %v2934_v57 }
0x2ba9   :  { %2935 = vrcp.f32 %v2197_v19 }
0x2bb3   :  { %v2936_v58 = vpop.eup %2935 }
0x2bb4   :  { %v2200_v59 = vmul.f32 2.0, %v2936_v58  ;;  %v2207_v13 = vmul.f32 %v2936_v58, %v2205_v3 }
0x2bb6   :  { %v2390_v61 = vadd.f32 -1.0, %v2200_v59 }
0x2bb8   :  { %2209 = vrot.lane.b32.xlu0 %v2390_v61, %s2942_s25 }
0x2c2a   :  { %v2210_v1 = vpop.permute.xlu0 %2209 }
0x2c2b   :  { %v2212_v2 = vmul.f32 %v2936_v58, %v2210_v1 }
0x2c2d   :  { %2214 = vrot.lane.b32.xlu0 %v2212_v2, %s2943_s3 }
0x2c9f   :  { %v2215_v60 = vpop.permute.xlu0 %2214 }
0x2ca0   :  { %v2217_v62 = vadd.f32 %v2215_v60, %v2207_v13 }
0x2ca2   :  { %2937 = vtanh.f32 %v2217_v62 }
0x2cac   :  { %v2938_v17 = vpop.eup %2937 }
0x2cad   :  { %2220 = vrot.lane.b32.xlu1 %v2938_v17, %s2942_s25 }
0x2cb1   :  { %2225 = vrot.lane.b32.xlu1 %v2217_v62, %s2944_s26 }
0x2d1f   :  { %v2221_v23 = vpop.permute.xlu1 %2220 }
0x2d20   :  { %v2223_v6 = vmul.f32 %v2936_v58, %v2221_v23 }
0x2d22   :  { %2230 = vrot.lane.b32.xlu0 %v2223_v6, %s2943_s3 }
0x2d23   :  { %v2226_v49 = vpop.permute.xlu1 %2225 }
0x2d24   :  { %2228 = vst.msk [vmem:[#allocation5] sm:$0xff] %vm187_vm2, %v2226_v49 }
0x2d94   :  { %v2231_v24 = vpop.permute.xlu0 %2230 }
0x2d95   :  { %2233 = vst.msk [vmem:[#allocation4] sm:$0xff] %vm187_vm2, %v2231_v24 }
0x2d9c   :  { %v2234_v25 = vld [vmem:[#allocation4] sm:$0xff] }
0x2d9d   :  { %2721 = vmatmul.mubr.msk.f32.vlgmr.msra.gmra.mrb[28].mxu0 %vm187_vm2, %v2234_v25 }
0x2e70   :  { %v2315_v52 = vpop.f32.mrb[28].mxu0 }
0x2e71   :  { %v2316_v0 = vadd.f32 %v2391_v26, %v2315_v52  ;;  %v2722_v27 = vpop.f32.mrb[29].mxu0 }
0x2e73   :  { %2320 = vst.msk [vmem:[%s3435_s9] sm:$0xff] %vm2319_vm3, %v2316_v0 }

</bundles_post_ra>
